<compile_context>
chip_gen: v5e
topology: v5e:2x2
jax: 0.10.0
libtpu: 0.0.40
codegen_flags: <defaults>
</compile_context>

<pallas_src>
from functools import partial
from math import pi, sqrt

import jax
import jax.numpy as jnp
from jax.experimental import pallas as pl
from jax.experimental.pallas import tpu as pltpu  # noqa: F401  (not needed for this gridless kernel)

# ----------------------------- static sizes ---------------------------------
N = 2              # batch
L = 132            # resampled vertex count (resample_num)
K_SHP = 40
K_EXP = 10
K = K_SHP + K_EXP  # 50 morphable-model coefficients
ROWS = 8           # padded batch rows (one sublane tile)
TP = 64            # padded 62-d parameter lanes; lane 62 carries the constant 1.0
ALPHA_OFF = 12     # alpha coefficients live at lanes [12, 62) of the 62-d param
CONST_LANE = ALPHA_OFF + K          # = 62
OFFSET_NORM = sqrt(L)               # sqrt(w_shp.shape[0] // 3)
EPS = 1e-6


# --------------------------- in-kernel helpers -------------------------------
def _atan2_nonneg(y, x):
    """atan2(y, x) for y >= 0 (result in [0, pi]) built only from +,*,/,sqrt,where.
    phi = atan(y/|x|) via two half-angle reductions + 9th-order odd polynomial
    (abs error ~1.4e-8 < f32 rounding of pi); x < 0 folds as pi - phi."""
    ax = jnp.abs(x)
    r = jnp.sqrt(x * x + y * y)
    t = y / (r + ax + 1e-30)                  # tan(phi/2) in [0, 1]
    t = t / (1.0 + jnp.sqrt(1.0 + t * t))     # tan(phi/4)
    t = t / (1.0 + jnp.sqrt(1.0 + t * t))     # tan(phi/8) <= tan(pi/16) ~ 0.199
    t2 = t * t
    phi = 8.0 * t * (1.0 + t2 * (-1.0 / 3.0 + t2 * (1.0 / 5.0
                     + t2 * (-1.0 / 7.0 + t2 * (1.0 / 9.0)))))
    return jnp.where(x < 0.0, pi - phi, phi)


def _axis_angle_s_t(m):
    """Reconstruction of get_axis_angle_s_t_from_rot_mat_batch on a (rows, >=12)
    tile whose lanes 0..11 hold the 3x4 [s*R | t] pose (row-major).  Returns
    (rows, 8) = [s, rotvec_x, rotvec_y, rotvec_z, tx, ty, tz, 0].
    # TODO(synk): original helper not in the reference snippet; same P2sRt +
    # atan2-Rodrigues reconstruction used (and verified) in the previous revision.
    """
    rows = m.shape[0]
    col = lambda j: m[:, j:j + 1]
    r00, r01, r02, t0 = col(0), col(1), col(2), col(3)
    r10, r11, r12, t1 = col(4), col(5), col(6), col(7)
    t2 = col(11)
    n1 = jnp.sqrt(r00 * r00 + r01 * r01 + r02 * r02)
    n2 = jnp.sqrt(r10 * r10 + r11 * r11 + r12 * r12)
    s = 0.5 * (n1 + n2)
    i1 = 1.0 / n1
    i2 = 1.0 / n2
    a0, a1, a2 = r00 * i1, r01 * i1, r02 * i1      # r1 (normalized)
    b0, b1, b2 = r10 * i2, r11 * i2, r12 * i2      # r2 (normalized)
    c0 = a1 * b2 - a2 * b1                         # r3 = r1 x r2
    c1 = a2 * b0 - a0 * b2
    c2 = a0 * b1 - a1 * b0
    v0 = c1 - b2                                   # R[2,1] - R[1,2]
    v1 = a2 - c0                                   # R[0,2] - R[2,0]
    v2 = b0 - a1                                   # R[1,0] - R[0,1]
    vnorm = jnp.sqrt(v0 * v0 + v1 * v1 + v2 * v2)
    cos_t = 0.5 * (a0 + b1 + c2 - 1.0)
    theta = _atan2_nonneg(0.5 * vnorm, cos_t)
    scale = theta / (vnorm + 1e-8)
    cols = (s, scale * v0, scale * v1, scale * v2, t0, t1, t2)
    lane = jax.lax.broadcasted_iota(jnp.int32, (rows, 8), 1)
    out = jnp.zeros((rows, 8), m.dtype)
    for j, c in enumerate(cols):
        out = jnp.where(lane == j, c, out)
    return out


# ------------------------------ Pallas kernel --------------------------------
def _fwpdc_loss_kernel(g_ref, mean_ref, std_ref, t_ref, ip_ref, out_ref, *, n_valid):
    # g_ref   : (TP, 3*TP)  concatenated per-coordinate Gram matrices (x | y | z)
    # mean_ref: (1, TP)     param_mean padded; lane 62 = 1.0 (constant-1 source)
    # std_ref : (1, TP)     param_std padded;  lane 62 = 0.0
    # t_ref   : (ROWS, TP)  zero-padded normalized 62-d target params
    # ip_ref  : (ROWS, 8)   zero-padded predicted pose [s, rotvec, t]
    mean = mean_ref[...]
    std = std_ref[...]

    # single denormalization; lanes 0..11 = pose, 12..61 = alpha, 62 = 1.0, 63 = 0
    td = std * t_ref[...] + mean                                         # (ROWS, TP)

    # ---- per-coordinate vertex norms via precomputed Gram quadratic forms ----
    B = jnp.dot(td, g_ref[...], preferred_element_type=jnp.float32)      # (ROWS, 3*TP)
    sx = jnp.sum(td * B[:, 0 * TP:1 * TP], axis=-1, keepdims=True)       # (ROWS, 1)
    sy = jnp.sum(td * B[:, 1 * TP:2 * TP], axis=-1, keepdims=True)
    sz = jnp.sum(td * B[:, 2 * TP:3 * TP], axis=-1, keepdims=True)
    norm_x = jnp.sqrt(jnp.maximum(sx, 0.0))
    norm_y = jnp.sqrt(jnp.maximum(sy, 0.0))
    norm_z = jnp.sqrt(jnp.maximum(sz, 0.0))
    norm_all = jnp.sqrt(jnp.maximum(sx + sy + sz, 0.0))

    # ---- target poses -> axis-angle ----
    # loss path:    single denorm (reference: calc_diff(input, raw target[:, :12]))
    # weights path: the reference's double denorm (calc_diff on the denormed target)
    td2 = std * td + mean
    pg = _axis_angle_s_t(td)                                             # (ROWS, 8)
    pgw = _axis_angle_s_t(td2)                                           # (ROWS, 8)

    ip = ip_ref[...]                                                     # (ROWS, 8)
    lane = jax.lax.broadcasted_iota(jnp.int32, (ROWS, 8), 1)
    row = jax.lax.broadcasted_iota(jnp.int32, (ROWS, 8), 0)

    # p_axis_angle = cat(|input[:, 0]|, input[:, 1:])  (abs only on column 0)
    p = jnp.where(lane == 0, jnp.abs(ip), ip)

    # per-column norm factors: [norm_all, nx, ny, nz, offset, offset, 0, 0]
    nf = jnp.where(lane == 0, norm_all,
         jnp.where(lane == 1, norm_x,
         jnp.where(lane == 2, norm_y,
         jnp.where(lane == 3, norm_z,
         jnp.where((lane == 4) | (lane == 5), OFFSET_NORM, 0.0)))))

    # ---- weights path ----
    w = jnp.abs(p - pgw) * nf + EPS                 # cols 6/7: 0*diff + EPS = EPS
    mx = jnp.max(w, axis=-1, keepdims=True)         # cols 6/7 never exceed the max
    w = jnp.where(lane >= 6, 0.0, w / mx)           # normalize; zero tz + padding

    # ---- loss path ----
    diff = p - pg
    contrib = w * diff * diff                       # cols 6/7 contribute 0
    contrib = jnp.where(row < n_valid, contrib, 0.0)

    total = jnp.sum(contrib, axis=-1, keepdims=True)                     # (ROWS, 1)
    total = jnp.sum(total, axis=0, keepdims=True)                        # (1, 1)
    out_ref[...] = total * (1.0 / float(n_valid * 7))


# --------------------------- init-time packing --------------------------------
def pack_constants(u, w_shp, w_exp, param_mean, param_std):
    """One-time (module init) packing of all constant operands.

    g_cat (TP, 3*TP): Gram matrices of the augmented per-coordinate basis
    [W_c ; u_c] (51 x L), embedded so they contract directly with the padded
    denormalized parameter row (alpha at lanes 12..61, constant 1.0 at lane 62).
    mean_p / std_p (1, TP): padded so lane 62 of std*x+mean is always exactly 1.0.
    """
    f32 = jnp.float32
    W = jnp.concatenate([w_shp, w_exp], axis=1).astype(f32)              # (3L, K)
    Wc = W.reshape(L, 3, K).transpose(1, 2, 0)                           # (3, K, L)
    uc = u.astype(f32).reshape(L, 3).T                                   # (3, L)
    blocks = []
    for c in range(3):
        w_aug = jnp.concatenate([Wc[c], uc[c][None, :]], axis=0)         # (K+1, L)
        gram = jnp.matmul(w_aug, w_aug.T,
                          precision=jax.lax.Precision.HIGHEST)           # (K+1, K+1)
        blocks.append(jnp.zeros((TP, TP), f32)
                      .at[ALPHA_OFF:CONST_LANE + 1,
                          ALPHA_OFF:CONST_LANE + 1].set(gram))
    g_cat = jnp.concatenate(blocks, axis=1)                              # (TP, 3*TP)

    mean_p = (jnp.zeros((1, TP), f32)
              .at[0, :62].set(param_mean.astype(f32))
              .at[0, CONST_LANE].set(1.0))
    std_p = (jnp.zeros((1, TP), f32)
             .at[0, :62].set(param_std.astype(f32))
             .at[0, CONST_LANE].set(0.0))
    return g_cat, mean_p, std_p


# ------------------------------ JAX wrapper -----------------------------------
def _fwpdc_axis_angle_loss(input_pose, target, g_cat, mean_p, std_p):
    """Forward pass.  All math runs in a single gridless pallas_call; the only
    per-call XLA work outside the kernel is zero-padding the two inputs."""
    f32 = jnp.float32
    n = target.shape[0]
    assert n <= ROWS
    t_pad = jnp.pad(target.astype(f32), ((0, ROWS - n), (0, TP - 62)))
    ip_pad = jnp.pad(input_pose.astype(f32), ((0, ROWS - n), (0, 8 - 7)))

    out = pl.pallas_call(
        partial(_fwpdc_loss_kernel, n_valid=n),
        out_shape=jax.ShapeDtypeStruct((1, 1), f32),
        cost_estimate=pl.CostEstimate(
            flops=2 * ROWS * TP * 3 * TP + 8 * ROWS * TP,
            transcendentals=64 * ROWS,
            bytes_accessed=(g_cat.size + mean_p.size + std_p.size
                            + ROWS * TP + ROWS * 8 + 1) * 4,
        ),
    )(g_cat, mean_p, std_p, t_pad, ip_pad)
    return out[0, 0]


fwpdc_axis_angle_loss = jax.jit(_fwpdc_axis_angle_loss)


# ------------------- pure-JAX reference (verification only) -------------------
def _reference_loss(input_pose, target, param_mean, param_std, u, w_shp, w_exp):
    def axis_angle(p12):
        P = p12.reshape(-1, 3, 4)
        Rp, t = P[:, :, :3], P[:, :, 3]
        n1 = jnp.linalg.norm(Rp[:, 0], axis=-1)
        n2 = jnp.linalg.norm(Rp[:, 1], axis=-1)
        s = 0.5 * (n1 + n2)
        r1 = Rp[:, 0] / n1[:, None]
        r2 = Rp[:, 1] / n2[:, None]
        r3 = jnp.cross(r1, r2)
        R = jnp.stack([r1, r2, r3], axis=1)
        v = jnp.stack([R[:, 2, 1] - R[:, 1, 2],
                       R[:, 0, 2] - R[:, 2, 0],
                       R[:, 1, 0] - R[:, 0, 1]], axis=-1)
        vn = jnp.linalg.norm(v, axis=-1)
        cos_t = 0.5 * (R[:, 0, 0] + R[:, 1, 1] + R[:, 2, 2] - 1.0)
        theta = jnp.arctan2(0.5 * vn, cos_t)
        rotvec = theta[:, None] * v / (vn[:, None] + 1e-8)
        return jnp.concatenate([s[:, None], rotvec, t], axis=1)

    def calc_diff(target_pose12):
        pg = param_std[:12] * target_pose12 + param_mean[:12]
        pga = axis_angle(pg)
        p = jnp.concatenate([jnp.abs(input_pose[:, :1]), input_pose[:, 1:]], axis=1)
        return p - pga

    td = param_std * target + param_mean
    alpha_shp, alpha_exp = td[:, 12:52], td[:, 52:62]
    verts = u[None, :] + alpha_shp @ w_shp.T + alpha_exp @ w_exp.T       # (N, 3L)
    tmpv = verts.reshape(-1, L, 3).transpose(0, 2, 1)                    # (N, 3, L)
    tn = jnp.linalg.norm(tmpv, axis=2)                                   # (N, 3)
    tna = jnp.linalg.norm(tmpv.reshape(tmpv.shape[0], -1), axis=1)       # (N,)

    dw = jnp.abs(calc_diff(td[:, :12]))             # weights path (double denorm)
    w = jnp.stack([dw[:, 0] * tna, dw[:, 1] * tn[:, 0], dw[:, 2] * tn[:, 1],
                   dw[:, 3] * tn[:, 2], dw[:, 4] * OFFSET_NORM,
                   dw[:, 5] * OFFSET_NORM, jnp.zeros_like(dw[:, 6])], axis=1)
    w = w + EPS
    w = w / jnp.max(w, axis=1, keepdims=True)
    w = w.at[:, 6].set(0.0)
    d = calc_diff(target[:, :12])                   # loss path (single denorm)
    return jnp.mean(w * d * d)


# ------------------------------- main -----------------------------------------
if __name__ == "__main__":
    key = jax.random.PRNGKey(0)
    ks = jax.random.split(key, 7)

    # deterministic synthetic "module parameters" (shapes from __init__)
    param_mean = jax.random.normal(ks[0], (62,), jnp.float32) * 0.1
    param_std = jax.random.uniform(ks[1], (62,), jnp.float32, minval=0.5, maxval=1.5)
    u = jax.random.normal(ks[2], (3 * L,), jnp.float32)                  # u_
    w_shp = jax.random.normal(ks[3], (3 * L, K_SHP), jnp.float32) * 0.1
    w_exp = jax.random.normal(ks[4], (3 * L, K_EXP), jnp.float32) * 0.1

    # example inputs
    input_pose = jax.random.normal(ks[5], (N, 7), jnp.float32)           # predicted [s, rotvec, t]
    target = jax.random.normal(ks[6], (N, 62), jnp.float32)              # normalized 62-d param

    # constants packed ONCE (module init) -- not in the per-call path
    g_cat, mean_p, std_p = jax.block_until_ready(
        pack_constants(u, w_shp, w_exp, param_mean, param_std))

    loss = fwpdc_axis_angle_loss(input_pose, target, g_cat, mean_p, std_p)
    loss = jax.block_until_ready(loss)

    ref = _reference_loss(input_pose, target, param_mean, param_std, u, w_shp, w_exp)
    rel = abs(float(loss) - float(ref)) / (abs(float(ref)) + 1e-8)
    assert loss.shape == () and bool(jnp.isfinite(loss)) and rel < 1e-3, (loss, ref, rel)
    print("KERNEL_OK")
</pallas_src>

<mosaic_0001>
module attributes {stable_mosaic.version = 11 : i64} {
  func.func @_fwpdc_loss_kernel(%arg0: memref<64x192xf32, #tpu.memory_space<vmem>>, %arg1: memref<1x64xf32, #tpu.memory_space<vmem>>, %arg2: memref<1x64xf32, #tpu.memory_space<vmem>>, %arg3: memref<8x64xf32, #tpu.memory_space<vmem>>, %arg4: memref<8x8xf32, #tpu.memory_space<vmem>>, %arg5: memref<1x1xf32, #tpu.memory_space<vmem>>) attributes {dimension_semantics = [], scalar_prefetch = 0 : i64, scratch_operands = 0 : i64, tpu.core_type = #tpu.core_type<tc>} {
    %c0 = arith.constant 0 : index
    %c0_0 = arith.constant 0 : index
    %0 = vector.load %arg1[%c0, %c0_0] : memref<1x64xf32, #tpu.memory_space<vmem>>, vector<1x64xf32>
    %c0_1 = arith.constant 0 : index
    %c0_2 = arith.constant 0 : index
    %1 = vector.load %arg2[%c0_1, %c0_2] : memref<1x64xf32, #tpu.memory_space<vmem>>, vector<1x64xf32>
    %c0_3 = arith.constant 0 : index
    %c0_4 = arith.constant 0 : index
    %2 = vector.load %arg3[%c0_3, %c0_4] : memref<8x64xf32, #tpu.memory_space<vmem>>, vector<8x64xf32>
    %3 = vector.broadcast %1 : vector<1x64xf32> to vector<8x64xf32>
    %4 = arith.mulf %3, %2 : vector<8x64xf32>
    %5 = vector.broadcast %0 : vector<1x64xf32> to vector<8x64xf32>
    %6 = arith.addf %4, %5 : vector<8x64xf32>
    %c0_5 = arith.constant 0 : index
    %c0_6 = arith.constant 0 : index
    %7 = vector.load %arg0[%c0_5, %c0_6] : memref<64x192xf32, #tpu.memory_space<vmem>>, vector<64x192xf32>
    %cst = arith.constant dense<0.000000e+00> : vector<8x192xf32>
    %8 = tpu.matmul %6, %7, %cst {dimension_numbers = #tpu.dot_dimension_numbers<[1], [0], [0], [1], [0, 0, 1, 1], [], []>} : vector<8x64xf32>, vector<64x192xf32>, vector<8x192xf32> -> vector<8x192xf32>
    %9 = vector.extract_strided_slice %8 {offsets = [0, 0], sizes = [8, 64], strides = [1, 1]} : vector<8x192xf32> to vector<8x64xf32>
    %10 = arith.mulf %6, %9 : vector<8x64xf32>
    %cst_7 = arith.constant dense<0.000000e+00> : vector<8xf32>
    %11 = vector.multi_reduction <add>, %10, %cst_7 [1] : vector<8x64xf32> to vector<8xf32>
    %12 = vector.shape_cast %11 : vector<8xf32> to vector<8x1xf32>
    %13 = vector.extract_strided_slice %8 {offsets = [0, 64], sizes = [8, 64], strides = [1, 1]} : vector<8x192xf32> to vector<8x64xf32>
    %14 = arith.mulf %6, %13 : vector<8x64xf32>
    %cst_8 = arith.constant dense<0.000000e+00> : vector<8xf32>
    %15 = vector.multi_reduction <add>, %14, %cst_8 [1] : vector<8x64xf32> to vector<8xf32>
    %16 = vector.shape_cast %15 : vector<8xf32> to vector<8x1xf32>
    %17 = vector.extract_strided_slice %8 {offsets = [0, 128], sizes = [8, 64], strides = [1, 1]} : vector<8x192xf32> to vector<8x64xf32>
    %18 = arith.mulf %6, %17 : vector<8x64xf32>
    %cst_9 = arith.constant dense<0.000000e+00> : vector<8xf32>
    %19 = vector.multi_reduction <add>, %18, %cst_9 [1] : vector<8x64xf32> to vector<8xf32>
    %20 = vector.shape_cast %19 : vector<8xf32> to vector<8x1xf32>
    %cst_10 = arith.constant 0.000000e+00 : f32
    %21 = vector.broadcast %cst_10 : f32 to vector<8x1xf32>
    %22 = arith.maximumf %12, %21 : vector<8x1xf32>
    %23 = math.sqrt %22 : vector<8x1xf32>
    %cst_11 = arith.constant 0.000000e+00 : f32
    %24 = vector.broadcast %cst_11 : f32 to vector<8x1xf32>
    %25 = arith.maximumf %16, %24 : vector<8x1xf32>
    %26 = math.sqrt %25 : vector<8x1xf32>
    %cst_12 = arith.constant 0.000000e+00 : f32
    %27 = vector.broadcast %cst_12 : f32 to vector<8x1xf32>
    %28 = arith.maximumf %20, %27 : vector<8x1xf32>
    %29 = math.sqrt %28 : vector<8x1xf32>
    %30 = arith.addf %12, %16 : vector<8x1xf32>
    %31 = arith.addf %30, %20 : vector<8x1xf32>
    %cst_13 = arith.constant 0.000000e+00 : f32
    %32 = vector.broadcast %cst_13 : f32 to vector<8x1xf32>
    %33 = arith.maximumf %31, %32 : vector<8x1xf32>
    %34 = math.sqrt %33 : vector<8x1xf32>
    %35 = vector.broadcast %1 : vector<1x64xf32> to vector<8x64xf32>
    %36 = arith.mulf %35, %6 : vector<8x64xf32>
    %37 = vector.broadcast %0 : vector<1x64xf32> to vector<8x64xf32>
    %38 = arith.addf %36, %37 : vector<8x64xf32>
    %39 = vector.extract_strided_slice %6 {offsets = [0, 0], sizes = [8, 1], strides = [1, 1]} : vector<8x64xf32> to vector<8x1xf32>
    %40 = vector.extract_strided_slice %6 {offsets = [0, 1], sizes = [8, 1], strides = [1, 1]} : vector<8x64xf32> to vector<8x1xf32>
    %41 = vector.extract_strided_slice %6 {offsets = [0, 2], sizes = [8, 1], strides = [1, 1]} : vector<8x64xf32> to vector<8x1xf32>
    %42 = vector.extract_strided_slice %6 {offsets = [0, 3], sizes = [8, 1], strides = [1, 1]} : vector<8x64xf32> to vector<8x1xf32>
    %43 = vector.extract_strided_slice %6 {offsets = [0, 4], sizes = [8, 1], strides = [1, 1]} : vector<8x64xf32> to vector<8x1xf32>
    %44 = vector.extract_strided_slice %6 {offsets = [0, 5], sizes = [8, 1], strides = [1, 1]} : vector<8x64xf32> to vector<8x1xf32>
    %45 = vector.extract_strided_slice %6 {offsets = [0, 6], sizes = [8, 1], strides = [1, 1]} : vector<8x64xf32> to vector<8x1xf32>
    %46 = vector.extract_strided_slice %6 {offsets = [0, 7], sizes = [8, 1], strides = [1, 1]} : vector<8x64xf32> to vector<8x1xf32>
    %47 = vector.extract_strided_slice %6 {offsets = [0, 11], sizes = [8, 1], strides = [1, 1]} : vector<8x64xf32> to vector<8x1xf32>
    %48 = arith.mulf %39, %39 : vector<8x1xf32>
    %49 = arith.mulf %40, %40 : vector<8x1xf32>
    %50 = arith.addf %48, %49 : vector<8x1xf32>
    %51 = arith.mulf %41, %41 : vector<8x1xf32>
    %52 = arith.addf %50, %51 : vector<8x1xf32>
    %53 = math.sqrt %52 : vector<8x1xf32>
    %54 = arith.mulf %43, %43 : vector<8x1xf32>
    %55 = arith.mulf %44, %44 : vector<8x1xf32>
    %56 = arith.addf %54, %55 : vector<8x1xf32>
    %57 = arith.mulf %45, %45 : vector<8x1xf32>
    %58 = arith.addf %56, %57 : vector<8x1xf32>
    %59 = math.sqrt %58 : vector<8x1xf32>
    %60 = arith.addf %53, %59 : vector<8x1xf32>
    %cst_14 = arith.constant 5.000000e-01 : f32
    %61 = vector.broadcast %cst_14 : f32 to vector<8x1xf32>
    %62 = arith.mulf %61, %60 : vector<8x1xf32>
    %cst_15 = arith.constant 1.000000e+00 : f32
    %63 = vector.broadcast %cst_15 : f32 to vector<8x1xf32>
    %64 = arith.divf %63, %53 : vector<8x1xf32>
    %cst_16 = arith.constant 1.000000e+00 : f32
    %65 = vector.broadcast %cst_16 : f32 to vector<8x1xf32>
    %66 = arith.divf %65, %59 : vector<8x1xf32>
    %67 = arith.mulf %39, %64 : vector<8x1xf32>
    %68 = arith.mulf %40, %64 : vector<8x1xf32>
    %69 = arith.mulf %41, %64 : vector<8x1xf32>
    %70 = arith.mulf %43, %66 : vector<8x1xf32>
    %71 = arith.mulf %44, %66 : vector<8x1xf32>
    %72 = arith.mulf %45, %66 : vector<8x1xf32>
    %73 = arith.mulf %68, %72 : vector<8x1xf32>
    %74 = arith.mulf %69, %71 : vector<8x1xf32>
    %75 = arith.subf %73, %74 : vector<8x1xf32>
    %76 = arith.mulf %69, %70 : vector<8x1xf32>
    %77 = arith.mulf %67, %72 : vector<8x1xf32>
    %78 = arith.subf %76, %77 : vector<8x1xf32>
    %79 = arith.mulf %67, %71 : vector<8x1xf32>
    %80 = arith.mulf %68, %70 : vector<8x1xf32>
    %81 = arith.subf %79, %80 : vector<8x1xf32>
    %82 = arith.subf %78, %72 : vector<8x1xf32>
    %83 = arith.subf %69, %75 : vector<8x1xf32>
    %84 = arith.subf %70, %68 : vector<8x1xf32>
    %85 = arith.mulf %82, %82 : vector<8x1xf32>
    %86 = arith.mulf %83, %83 : vector<8x1xf32>
    %87 = arith.addf %85, %86 : vector<8x1xf32>
    %88 = arith.mulf %84, %84 : vector<8x1xf32>
    %89 = arith.addf %87, %88 : vector<8x1xf32>
    %90 = math.sqrt %89 : vector<8x1xf32>
    %91 = arith.addf %67, %71 : vector<8x1xf32>
    %92 = arith.addf %91, %81 : vector<8x1xf32>
    %cst_17 = arith.constant 1.000000e+00 : f32
    %93 = vector.broadcast %cst_17 : f32 to vector<8x1xf32>
    %94 = arith.subf %92, %93 : vector<8x1xf32>
    %cst_18 = arith.constant 5.000000e-01 : f32
    %95 = vector.broadcast %cst_18 : f32 to vector<8x1xf32>
    %96 = arith.mulf %95, %94 : vector<8x1xf32>
    %cst_19 = arith.constant 5.000000e-01 : f32
    %97 = vector.broadcast %cst_19 : f32 to vector<8x1xf32>
    %98 = arith.mulf %97, %90 : vector<8x1xf32>
    %99 = math.absf %96 : vector<8x1xf32>
    %100 = arith.mulf %96, %96 : vector<8x1xf32>
    %101 = arith.mulf %98, %98 : vector<8x1xf32>
    %102 = arith.addf %100, %101 : vector<8x1xf32>
    %103 = math.sqrt %102 : vector<8x1xf32>
    %104 = arith.addf %103, %99 : vector<8x1xf32>
    %cst_20 = arith.constant 1.000000e-30 : f32
    %105 = vector.broadcast %cst_20 : f32 to vector<8x1xf32>
    %106 = arith.addf %104, %105 : vector<8x1xf32>
    %107 = arith.divf %98, %106 : vector<8x1xf32>
    %108 = arith.mulf %107, %107 : vector<8x1xf32>
    %cst_21 = arith.constant 1.000000e+00 : f32
    %109 = vector.broadcast %cst_21 : f32 to vector<8x1xf32>
    %110 = arith.addf %109, %108 : vector<8x1xf32>
    %111 = math.sqrt %110 : vector<8x1xf32>
    %cst_22 = arith.constant 1.000000e+00 : f32
    %112 = vector.broadcast %cst_22 : f32 to vector<8x1xf32>
    %113 = arith.addf %112, %111 : vector<8x1xf32>
    %114 = arith.divf %107, %113 : vector<8x1xf32>
    %115 = arith.mulf %114, %114 : vector<8x1xf32>
    %cst_23 = arith.constant 1.000000e+00 : f32
    %116 = vector.broadcast %cst_23 : f32 to vector<8x1xf32>
    %117 = arith.addf %116, %115 : vector<8x1xf32>
    %118 = math.sqrt %117 : vector<8x1xf32>
    %cst_24 = arith.constant 1.000000e+00 : f32
    %119 = vector.broadcast %cst_24 : f32 to vector<8x1xf32>
    %120 = arith.addf %119, %118 : vector<8x1xf32>
    %121 = arith.divf %114, %120 : vector<8x1xf32>
    %122 = arith.mulf %121, %121 : vector<8x1xf32>
    %cst_25 = arith.constant 8.000000e+00 : f32
    %123 = vector.broadcast %cst_25 : f32 to vector<8x1xf32>
    %124 = arith.mulf %123, %121 : vector<8x1xf32>
    %cst_26 = arith.constant 0.111111112 : f32
    %125 = vector.broadcast %cst_26 : f32 to vector<8x1xf32>
    %126 = arith.mulf %122, %125 : vector<8x1xf32>
    %cst_27 = arith.constant -0.142857149 : f32
    %127 = vector.broadcast %cst_27 : f32 to vector<8x1xf32>
    %128 = arith.addf %127, %126 : vector<8x1xf32>
    %129 = arith.mulf %122, %128 : vector<8x1xf32>
    %cst_28 = arith.constant 2.000000e-01 : f32
    %130 = vector.broadcast %cst_28 : f32 to vector<8x1xf32>
    %131 = arith.addf %130, %129 : vector<8x1xf32>
    %132 = arith.mulf %122, %131 : vector<8x1xf32>
    %cst_29 = arith.constant -0.333333343 : f32
    %133 = vector.broadcast %cst_29 : f32 to vector<8x1xf32>
    %134 = arith.addf %133, %132 : vector<8x1xf32>
    %135 = arith.mulf %122, %134 : vector<8x1xf32>
    %cst_30 = arith.constant 1.000000e+00 : f32
    %136 = vector.broadcast %cst_30 : f32 to vector<8x1xf32>
    %137 = arith.addf %136, %135 : vector<8x1xf32>
    %138 = arith.mulf %124, %137 : vector<8x1xf32>
    %cst_31 = arith.constant 0.000000e+00 : f32
    %139 = vector.broadcast %cst_31 : f32 to vector<8x1xf32>
    %140 = arith.cmpf olt, %96, %139 : vector<8x1xf32>
    %cst_32 = arith.constant 3.14159274 : f32
    %141 = vector.broadcast %cst_32 : f32 to vector<8x1xf32>
    %142 = arith.subf %141, %138 : vector<8x1xf32>
    %143 = arith.select %140, %142, %138 : vector<8x1xi1>, vector<8x1xf32>
    %cst_33 = arith.constant 9.99999993E-9 : f32
    %144 = vector.broadcast %cst_33 : f32 to vector<8x1xf32>
    %145 = arith.addf %90, %144 : vector<8x1xf32>
    %146 = arith.divf %143, %145 : vector<8x1xf32>
    %147 = arith.mulf %146, %82 : vector<8x1xf32>
    %148 = arith.mulf %146, %83 : vector<8x1xf32>
    %149 = arith.mulf %146, %84 : vector<8x1xf32>
    %150 = tpu.iota {dimensions = array<i32: 1>} : vector<8x8xi32>
    %cst_34 = arith.constant 0.000000e+00 : f32
    %151 = vector.broadcast %cst_34 : f32 to vector<8x8xf32>
    %c0_i32 = arith.constant 0 : i32
    %152 = vector.broadcast %c0_i32 : i32 to vector<8x8xi32>
    %153 = arith.cmpi eq, %150, %152 : vector<8x8xi32>
    %154 = vector.shape_cast %62 : vector<8x1xf32> to vector<8x1xf32>
    %155 = vector.broadcast %154 : vector<8x1xf32> to vector<8x8xf32>
    %156 = arith.select %153, %155, %151 : vector<8x8xi1>, vector<8x8xf32>
    %c1_i32 = arith.constant 1 : i32
    %157 = vector.broadcast %c1_i32 : i32 to vector<8x8xi32>
    %158 = arith.cmpi eq, %150, %157 : vector<8x8xi32>
    %159 = vector.shape_cast %147 : vector<8x1xf32> to vector<8x1xf32>
    %160 = vector.broadcast %159 : vector<8x1xf32> to vector<8x8xf32>
    %161 = arith.select %158, %160, %156 : vector<8x8xi1>, vector<8x8xf32>
    %c2_i32 = arith.constant 2 : i32
    %162 = vector.broadcast %c2_i32 : i32 to vector<8x8xi32>
    %163 = arith.cmpi eq, %150, %162 : vector<8x8xi32>
    %164 = vector.shape_cast %148 : vector<8x1xf32> to vector<8x1xf32>
    %165 = vector.broadcast %164 : vector<8x1xf32> to vector<8x8xf32>
    %166 = arith.select %163, %165, %161 : vector<8x8xi1>, vector<8x8xf32>
    %c3_i32 = arith.constant 3 : i32
    %167 = vector.broadcast %c3_i32 : i32 to vector<8x8xi32>
    %168 = arith.cmpi eq, %150, %167 : vector<8x8xi32>
    %169 = vector.shape_cast %149 : vector<8x1xf32> to vector<8x1xf32>
    %170 = vector.broadcast %169 : vector<8x1xf32> to vector<8x8xf32>
    %171 = arith.select %168, %170, %166 : vector<8x8xi1>, vector<8x8xf32>
    %c4_i32 = arith.constant 4 : i32
    %172 = vector.broadcast %c4_i32 : i32 to vector<8x8xi32>
    %173 = arith.cmpi eq, %150, %172 : vector<8x8xi32>
    %174 = vector.shape_cast %42 : vector<8x1xf32> to vector<8x1xf32>
    %175 = vector.broadcast %174 : vector<8x1xf32> to vector<8x8xf32>
    %176 = arith.select %173, %175, %171 : vector<8x8xi1>, vector<8x8xf32>
    %c5_i32 = arith.constant 5 : i32
    %177 = vector.broadcast %c5_i32 : i32 to vector<8x8xi32>
    %178 = arith.cmpi eq, %150, %177 : vector<8x8xi32>
    %179 = vector.shape_cast %46 : vector<8x1xf32> to vector<8x1xf32>
    %180 = vector.broadcast %179 : vector<8x1xf32> to vector<8x8xf32>
    %181 = arith.select %178, %180, %176 : vector<8x8xi1>, vector<8x8xf32>
    %c6_i32 = arith.constant 6 : i32
    %182 = vector.broadcast %c6_i32 : i32 to vector<8x8xi32>
    %183 = arith.cmpi eq, %150, %182 : vector<8x8xi32>
    %184 = vector.shape_cast %47 : vector<8x1xf32> to vector<8x1xf32>
    %185 = vector.broadcast %184 : vector<8x1xf32> to vector<8x8xf32>
    %186 = arith.select %183, %185, %181 : vector<8x8xi1>, vector<8x8xf32>
    %187 = vector.extract_strided_slice %38 {offsets = [0, 0], sizes = [8, 1], strides = [1, 1]} : vector<8x64xf32> to vector<8x1xf32>
    %188 = vector.extract_strided_slice %38 {offsets = [0, 1], sizes = [8, 1], strides = [1, 1]} : vector<8x64xf32> to vector<8x1xf32>
    %189 = vector.extract_strided_slice %38 {offsets = [0, 2], sizes = [8, 1], strides = [1, 1]} : vector<8x64xf32> to vector<8x1xf32>
    %190 = vector.extract_strided_slice %38 {offsets = [0, 3], sizes = [8, 1], strides = [1, 1]} : vector<8x64xf32> to vector<8x1xf32>
    %191 = vector.extract_strided_slice %38 {offsets = [0, 4], sizes = [8, 1], strides = [1, 1]} : vector<8x64xf32> to vector<8x1xf32>
    %192 = vector.extract_strided_slice %38 {offsets = [0, 5], sizes = [8, 1], strides = [1, 1]} : vector<8x64xf32> to vector<8x1xf32>
    %193 = vector.extract_strided_slice %38 {offsets = [0, 6], sizes = [8, 1], strides = [1, 1]} : vector<8x64xf32> to vector<8x1xf32>
    %194 = vector.extract_strided_slice %38 {offsets = [0, 7], sizes = [8, 1], strides = [1, 1]} : vector<8x64xf32> to vector<8x1xf32>
    %195 = vector.extract_strided_slice %38 {offsets = [0, 11], sizes = [8, 1], strides = [1, 1]} : vector<8x64xf32> to vector<8x1xf32>
    %196 = arith.mulf %187, %187 : vector<8x1xf32>
    %197 = arith.mulf %188, %188 : vector<8x1xf32>
    %198 = arith.addf %196, %197 : vector<8x1xf32>
    %199 = arith.mulf %189, %189 : vector<8x1xf32>
    %200 = arith.addf %198, %199 : vector<8x1xf32>
    %201 = math.sqrt %200 : vector<8x1xf32>
    %202 = arith.mulf %191, %191 : vector<8x1xf32>
    %203 = arith.mulf %192, %192 : vector<8x1xf32>
    %204 = arith.addf %202, %203 : vector<8x1xf32>
    %205 = arith.mulf %193, %193 : vector<8x1xf32>
    %206 = arith.addf %204, %205 : vector<8x1xf32>
    %207 = math.sqrt %206 : vector<8x1xf32>
    %208 = arith.addf %201, %207 : vector<8x1xf32>
    %cst_35 = arith.constant 5.000000e-01 : f32
    %209 = vector.broadcast %cst_35 : f32 to vector<8x1xf32>
    %210 = arith.mulf %209, %208 : vector<8x1xf32>
    %cst_36 = arith.constant 1.000000e+00 : f32
    %211 = vector.broadcast %cst_36 : f32 to vector<8x1xf32>
    %212 = arith.divf %211, %201 : vector<8x1xf32>
    %cst_37 = arith.constant 1.000000e+00 : f32
    %213 = vector.broadcast %cst_37 : f32 to vector<8x1xf32>
    %214 = arith.divf %213, %207 : vector<8x1xf32>
    %215 = arith.mulf %187, %212 : vector<8x1xf32>
    %216 = arith.mulf %188, %212 : vector<8x1xf32>
    %217 = arith.mulf %189, %212 : vector<8x1xf32>
    %218 = arith.mulf %191, %214 : vector<8x1xf32>
    %219 = arith.mulf %192, %214 : vector<8x1xf32>
    %220 = arith.mulf %193, %214 : vector<8x1xf32>
    %221 = arith.mulf %216, %220 : vector<8x1xf32>
    %222 = arith.mulf %217, %219 : vector<8x1xf32>
    %223 = arith.subf %221, %222 : vector<8x1xf32>
    %224 = arith.mulf %217, %218 : vector<8x1xf32>
    %225 = arith.mulf %215, %220 : vector<8x1xf32>
    %226 = arith.subf %224, %225 : vector<8x1xf32>
    %227 = arith.mulf %215, %219 : vector<8x1xf32>
    %228 = arith.mulf %216, %218 : vector<8x1xf32>
    %229 = arith.subf %227, %228 : vector<8x1xf32>
    %230 = arith.subf %226, %220 : vector<8x1xf32>
    %231 = arith.subf %217, %223 : vector<8x1xf32>
    %232 = arith.subf %218, %216 : vector<8x1xf32>
    %233 = arith.mulf %230, %230 : vector<8x1xf32>
    %234 = arith.mulf %231, %231 : vector<8x1xf32>
    %235 = arith.addf %233, %234 : vector<8x1xf32>
    %236 = arith.mulf %232, %232 : vector<8x1xf32>
    %237 = arith.addf %235, %236 : vector<8x1xf32>
    %238 = math.sqrt %237 : vector<8x1xf32>
    %239 = arith.addf %215, %219 : vector<8x1xf32>
    %240 = arith.addf %239, %229 : vector<8x1xf32>
    %cst_38 = arith.constant 1.000000e+00 : f32
    %241 = vector.broadcast %cst_38 : f32 to vector<8x1xf32>
    %242 = arith.subf %240, %241 : vector<8x1xf32>
    %cst_39 = arith.constant 5.000000e-01 : f32
    %243 = vector.broadcast %cst_39 : f32 to vector<8x1xf32>
    %244 = arith.mulf %243, %242 : vector<8x1xf32>
    %cst_40 = arith.constant 5.000000e-01 : f32
    %245 = vector.broadcast %cst_40 : f32 to vector<8x1xf32>
    %246 = arith.mulf %245, %238 : vector<8x1xf32>
    %247 = math.absf %244 : vector<8x1xf32>
    %248 = arith.mulf %244, %244 : vector<8x1xf32>
    %249 = arith.mulf %246, %246 : vector<8x1xf32>
    %250 = arith.addf %248, %249 : vector<8x1xf32>
    %251 = math.sqrt %250 : vector<8x1xf32>
    %252 = arith.addf %251, %247 : vector<8x1xf32>
    %cst_41 = arith.constant 1.000000e-30 : f32
    %253 = vector.broadcast %cst_41 : f32 to vector<8x1xf32>
    %254 = arith.addf %252, %253 : vector<8x1xf32>
    %255 = arith.divf %246, %254 : vector<8x1xf32>
    %256 = arith.mulf %255, %255 : vector<8x1xf32>
    %cst_42 = arith.constant 1.000000e+00 : f32
    %257 = vector.broadcast %cst_42 : f32 to vector<8x1xf32>
    %258 = arith.addf %257, %256 : vector<8x1xf32>
    %259 = math.sqrt %258 : vector<8x1xf32>
    %cst_43 = arith.constant 1.000000e+00 : f32
    %260 = vector.broadcast %cst_43 : f32 to vector<8x1xf32>
    %261 = arith.addf %260, %259 : vector<8x1xf32>
    %262 = arith.divf %255, %261 : vector<8x1xf32>
    %263 = arith.mulf %262, %262 : vector<8x1xf32>
    %cst_44 = arith.constant 1.000000e+00 : f32
    %264 = vector.broadcast %cst_44 : f32 to vector<8x1xf32>
    %265 = arith.addf %264, %263 : vector<8x1xf32>
    %266 = math.sqrt %265 : vector<8x1xf32>
    %cst_45 = arith.constant 1.000000e+00 : f32
    %267 = vector.broadcast %cst_45 : f32 to vector<8x1xf32>
    %268 = arith.addf %267, %266 : vector<8x1xf32>
    %269 = arith.divf %262, %268 : vector<8x1xf32>
    %270 = arith.mulf %269, %269 : vector<8x1xf32>
    %cst_46 = arith.constant 8.000000e+00 : f32
    %271 = vector.broadcast %cst_46 : f32 to vector<8x1xf32>
    %272 = arith.mulf %271, %269 : vector<8x1xf32>
    %cst_47 = arith.constant 0.111111112 : f32
    %273 = vector.broadcast %cst_47 : f32 to vector<8x1xf32>
    %274 = arith.mulf %270, %273 : vector<8x1xf32>
    %cst_48 = arith.constant -0.142857149 : f32
    %275 = vector.broadcast %cst_48 : f32 to vector<8x1xf32>
    %276 = arith.addf %275, %274 : vector<8x1xf32>
    %277 = arith.mulf %270, %276 : vector<8x1xf32>
    %cst_49 = arith.constant 2.000000e-01 : f32
    %278 = vector.broadcast %cst_49 : f32 to vector<8x1xf32>
    %279 = arith.addf %278, %277 : vector<8x1xf32>
    %280 = arith.mulf %270, %279 : vector<8x1xf32>
    %cst_50 = arith.constant -0.333333343 : f32
    %281 = vector.broadcast %cst_50 : f32 to vector<8x1xf32>
    %282 = arith.addf %281, %280 : vector<8x1xf32>
    %283 = arith.mulf %270, %282 : vector<8x1xf32>
    %cst_51 = arith.constant 1.000000e+00 : f32
    %284 = vector.broadcast %cst_51 : f32 to vector<8x1xf32>
    %285 = arith.addf %284, %283 : vector<8x1xf32>
    %286 = arith.mulf %272, %285 : vector<8x1xf32>
    %cst_52 = arith.constant 0.000000e+00 : f32
    %287 = vector.broadcast %cst_52 : f32 to vector<8x1xf32>
    %288 = arith.cmpf olt, %244, %287 : vector<8x1xf32>
    %cst_53 = arith.constant 3.14159274 : f32
    %289 = vector.broadcast %cst_53 : f32 to vector<8x1xf32>
    %290 = arith.subf %289, %286 : vector<8x1xf32>
    %291 = arith.select %288, %290, %286 : vector<8x1xi1>, vector<8x1xf32>
    %cst_54 = arith.constant 9.99999993E-9 : f32
    %292 = vector.broadcast %cst_54 : f32 to vector<8x1xf32>
    %293 = arith.addf %238, %292 : vector<8x1xf32>
    %294 = arith.divf %291, %293 : vector<8x1xf32>
    %295 = arith.mulf %294, %230 : vector<8x1xf32>
    %296 = arith.mulf %294, %231 : vector<8x1xf32>
    %297 = arith.mulf %294, %232 : vector<8x1xf32>
    %298 = tpu.iota {dimensions = array<i32: 1>} : vector<8x8xi32>
    %cst_55 = arith.constant 0.000000e+00 : f32
    %299 = vector.broadcast %cst_55 : f32 to vector<8x8xf32>
    %c0_i32_56 = arith.constant 0 : i32
    %300 = vector.broadcast %c0_i32_56 : i32 to vector<8x8xi32>
    %301 = arith.cmpi eq, %298, %300 : vector<8x8xi32>
    %302 = vector.shape_cast %210 : vector<8x1xf32> to vector<8x1xf32>
    %303 = vector.broadcast %302 : vector<8x1xf32> to vector<8x8xf32>
    %304 = arith.select %301, %303, %299 : vector<8x8xi1>, vector<8x8xf32>
    %c1_i32_57 = arith.constant 1 : i32
    %305 = vector.broadcast %c1_i32_57 : i32 to vector<8x8xi32>
    %306 = arith.cmpi eq, %298, %305 : vector<8x8xi32>
    %307 = vector.shape_cast %295 : vector<8x1xf32> to vector<8x1xf32>
    %308 = vector.broadcast %307 : vector<8x1xf32> to vector<8x8xf32>
    %309 = arith.select %306, %308, %304 : vector<8x8xi1>, vector<8x8xf32>
    %c2_i32_58 = arith.constant 2 : i32
    %310 = vector.broadcast %c2_i32_58 : i32 to vector<8x8xi32>
    %311 = arith.cmpi eq, %298, %310 : vector<8x8xi32>
    %312 = vector.shape_cast %296 : vector<8x1xf32> to vector<8x1xf32>
    %313 = vector.broadcast %312 : vector<8x1xf32> to vector<8x8xf32>
    %314 = arith.select %311, %313, %309 : vector<8x8xi1>, vector<8x8xf32>
    %c3_i32_59 = arith.constant 3 : i32
    %315 = vector.broadcast %c3_i32_59 : i32 to vector<8x8xi32>
    %316 = arith.cmpi eq, %298, %315 : vector<8x8xi32>
    %317 = vector.shape_cast %297 : vector<8x1xf32> to vector<8x1xf32>
    %318 = vector.broadcast %317 : vector<8x1xf32> to vector<8x8xf32>
    %319 = arith.select %316, %318, %314 : vector<8x8xi1>, vector<8x8xf32>
    %c4_i32_60 = arith.constant 4 : i32
    %320 = vector.broadcast %c4_i32_60 : i32 to vector<8x8xi32>
    %321 = arith.cmpi eq, %298, %320 : vector<8x8xi32>
    %322 = vector.shape_cast %190 : vector<8x1xf32> to vector<8x1xf32>
    %323 = vector.broadcast %322 : vector<8x1xf32> to vector<8x8xf32>
    %324 = arith.select %321, %323, %319 : vector<8x8xi1>, vector<8x8xf32>
    %c5_i32_61 = arith.constant 5 : i32
    %325 = vector.broadcast %c5_i32_61 : i32 to vector<8x8xi32>
    %326 = arith.cmpi eq, %298, %325 : vector<8x8xi32>
    %327 = vector.shape_cast %194 : vector<8x1xf32> to vector<8x1xf32>
    %328 = vector.broadcast %327 : vector<8x1xf32> to vector<8x8xf32>
    %329 = arith.select %326, %328, %324 : vector<8x8xi1>, vector<8x8xf32>
    %c6_i32_62 = arith.constant 6 : i32
    %330 = vector.broadcast %c6_i32_62 : i32 to vector<8x8xi32>
    %331 = arith.cmpi eq, %298, %330 : vector<8x8xi32>
    %332 = vector.shape_cast %195 : vector<8x1xf32> to vector<8x1xf32>
    %333 = vector.broadcast %332 : vector<8x1xf32> to vector<8x8xf32>
    %334 = arith.select %331, %333, %329 : vector<8x8xi1>, vector<8x8xf32>
    %c0_63 = arith.constant 0 : index
    %c0_64 = arith.constant 0 : index
    %335 = vector.load %arg4[%c0_63, %c0_64] : memref<8x8xf32, #tpu.memory_space<vmem>>, vector<8x8xf32>
    %336 = tpu.iota {dimensions = array<i32: 1>} : vector<8x8xi32>
    %337 = tpu.iota {dimensions = array<i32: 0>} : vector<8x8xi32>
    %c0_i32_65 = arith.constant 0 : i32
    %338 = vector.broadcast %c0_i32_65 : i32 to vector<8x8xi32>
    %339 = arith.cmpi eq, %336, %338 : vector<8x8xi32>
    %340 = math.absf %335 : vector<8x8xf32>
    %341 = arith.select %339, %340, %335 : vector<8x8xi1>, vector<8x8xf32>
    %c0_i32_66 = arith.constant 0 : i32
    %342 = vector.broadcast %c0_i32_66 : i32 to vector<8x8xi32>
    %343 = arith.cmpi eq, %336, %342 : vector<8x8xi32>
    %c1_i32_67 = arith.constant 1 : i32
    %344 = vector.broadcast %c1_i32_67 : i32 to vector<8x8xi32>
    %345 = arith.cmpi eq, %336, %344 : vector<8x8xi32>
    %c2_i32_68 = arith.constant 2 : i32
    %346 = vector.broadcast %c2_i32_68 : i32 to vector<8x8xi32>
    %347 = arith.cmpi eq, %336, %346 : vector<8x8xi32>
    %c3_i32_69 = arith.constant 3 : i32
    %348 = vector.broadcast %c3_i32_69 : i32 to vector<8x8xi32>
    %349 = arith.cmpi eq, %336, %348 : vector<8x8xi32>
    %c4_i32_70 = arith.constant 4 : i32
    %350 = vector.broadcast %c4_i32_70 : i32 to vector<8x8xi32>
    %351 = arith.cmpi eq, %336, %350 : vector<8x8xi32>
    %c5_i32_71 = arith.constant 5 : i32
    %352 = vector.broadcast %c5_i32_71 : i32 to vector<8x8xi32>
    %353 = arith.cmpi eq, %336, %352 : vector<8x8xi32>
    %354 = arith.ori %351, %353 : vector<8x8xi1>
    %cst_72 = arith.constant 11.4891253 : f32
    %cst_73 = arith.constant 0.000000e+00 : f32
    %355 = vector.broadcast %cst_72 : f32 to vector<8x8xf32>
    %356 = vector.broadcast %cst_73 : f32 to vector<8x8xf32>
    %357 = arith.select %354, %355, %356 : vector<8x8xi1>, vector<8x8xf32>
    %358 = vector.shape_cast %29 : vector<8x1xf32> to vector<8x1xf32>
    %359 = vector.broadcast %358 : vector<8x1xf32> to vector<8x8xf32>
    %360 = arith.select %349, %359, %357 : vector<8x8xi1>, vector<8x8xf32>
    %361 = vector.shape_cast %26 : vector<8x1xf32> to vector<8x1xf32>
    %362 = vector.broadcast %361 : vector<8x1xf32> to vector<8x8xf32>
    %363 = arith.select %347, %362, %360 : vector<8x8xi1>, vector<8x8xf32>
    %364 = vector.shape_cast %23 : vector<8x1xf32> to vector<8x1xf32>
    %365 = vector.broadcast %364 : vector<8x1xf32> to vector<8x8xf32>
    %366 = arith.select %345, %365, %363 : vector<8x8xi1>, vector<8x8xf32>
    %367 = vector.shape_cast %34 : vector<8x1xf32> to vector<8x1xf32>
    %368 = vector.broadcast %367 : vector<8x1xf32> to vector<8x8xf32>
    %369 = arith.select %343, %368, %366 : vector<8x8xi1>, vector<8x8xf32>
    %370 = arith.subf %341, %334 : vector<8x8xf32>
    %371 = math.absf %370 : vector<8x8xf32>
    %372 = arith.mulf %371, %369 : vector<8x8xf32>
    %cst_74 = arith.constant 9.99999997E-7 : f32
    %373 = vector.broadcast %cst_74 : f32 to vector<8x8xf32>
    %374 = arith.addf %372, %373 : vector<8x8xf32>
    %cst_75 = arith.constant dense<0xFF800000> : vector<8xf32>
    %375 = vector.multi_reduction <maximumf>, %374, %cst_75 [1] : vector<8x8xf32> to vector<8xf32>
    %376 = vector.shape_cast %375 : vector<8xf32> to vector<8x1xf32>
    %c6_i32_76 = arith.constant 6 : i32
    %377 = vector.broadcast %c6_i32_76 : i32 to vector<8x8xi32>
    %378 = arith.cmpi sge, %336, %377 : vector<8x8xi32>
    %379 = vector.broadcast %376 : vector<8x1xf32> to vector<8x8xf32>
    %380 = arith.divf %374, %379 : vector<8x8xf32>
    %cst_77 = arith.constant 0.000000e+00 : f32
    %381 = vector.broadcast %cst_77 : f32 to vector<8x8xf32>
    %382 = arith.select %378, %381, %380 : vector<8x8xi1>, vector<8x8xf32>
    %383 = arith.subf %341, %186 : vector<8x8xf32>
    %384 = arith.mulf %382, %383 : vector<8x8xf32>
    %385 = arith.mulf %384, %383 : vector<8x8xf32>
    %c2_i32_78 = arith.constant 2 : i32
    %386 = vector.broadcast %c2_i32_78 : i32 to vector<8x8xi32>
    %387 = arith.cmpi slt, %337, %386 : vector<8x8xi32>
    %cst_79 = arith.constant 0.000000e+00 : f32
    %388 = vector.broadcast %cst_79 : f32 to vector<8x8xf32>
    %389 = arith.select %387, %385, %388 : vector<8x8xi1>, vector<8x8xf32>
    %cst_80 = arith.constant dense<0.000000e+00> : vector<8xf32>
    %390 = vector.multi_reduction <add>, %389, %cst_80 [1] : vector<8x8xf32> to vector<8xf32>
    %391 = vector.shape_cast %390 : vector<8xf32> to vector<8x1xf32>
    %cst_81 = arith.constant dense<0.000000e+00> : vector<1xf32>
    %392 = vector.multi_reduction <add>, %391, %cst_81 [0] : vector<8x1xf32> to vector<1xf32>
    %393 = vector.shape_cast %392 : vector<1xf32> to vector<1x1xf32>
    %cst_82 = arith.constant 0.0714285746 : f32
    %394 = vector.broadcast %cst_82 : f32 to vector<1x1xf32>
    %395 = arith.mulf %393, %394 : vector<1x1xf32>
    %c0_83 = arith.constant 0 : index
    %c0_84 = arith.constant 0 : index
    %396 = vector.load %arg5[%c0_83, %c0_84] : memref<1x1xf32, #tpu.memory_space<vmem>>, vector<1x1xf32>
    tpu.vector_store %arg5[%c0_83, %c0_84], %395 {strides = array<i32>} : memref<1x1xf32, #tpu.memory_space<vmem>>, vector<1x1xf32>,
    return
  }
}

</mosaic_0001>

<bundles_post_ra>
// kernel: _fwpdc_axis_angle_loss.1
= control target key start
LH: loop header
LB: loop body
LE: loop exit
PB: predicated region body
PF: predicated region fallthrough
CT: control target
= control target key end

     0   :  { %10 = vsyncpa [#allocation3], 0  ;;  %s1450_s0 = inlined_call_operand.hbm [shape: f32[64,192], index: 0, kind: input, shape index: {}]   ;;  %s1451_s1 = inlined_call_operand.vmem [shape: f32[1,64], index: 1, kind: input, shape index: {}]   ;;  %s1452_s2 = inlined_call_operand.vmem [shape: f32[1,64], index: 2, kind: input, shape index: {}]   ;;  %s1453_s3 = inlined_call_operand.vmem [shape: f32[8,64], index: 3, kind: input, shape index: {}]   ;;  %s1454_s4 = inlined_call_operand.vmem [shape: f32[8,8], index: 4, kind: input, shape index: {}]   ;;  %s1455_s5 = inlined_call_operand.hbm [shape: f32[1,1], index: 5, kind: output, shape index: {}]  }
   0x1   :  { %11 = vsyncpa [#allocation4], 0  ;;  %s16_s20 = sshll.u32 %s1450_s0, 4  ;;  %s1060_s21 = smov [#allocation2]   ;;  %s17_s20 = int_to_ptr.hbm [resolvable:$true] %s16_s20 }
   0x2   :  { %s18_s22 = sshll.u32 %s1060_s21, 4  ;;  %s1061_s23 = smov 256   ;;  %s19_s22 = int_to_ptr.vmem [resolvable:$true] %s18_s22 }
   0x3   :  { %s1062_s24 = smov 16  }
   0x4   :  { %24 = dma.hbm_to_vmem [thread:$0]  %s17_s20, 2048, %s19_s22, [#allocation3], %s1061_s23, %s1061_s23, %s1062_s24  }
   0x5   :  { %1056 = dma.done.wait [#allocation3], 2048  }
   0x6   :  { %1057 = vsyncadd [#allocation3], 4294965248  ;;  %v39_v0 = vld [vmem:[%s1453_s3] sm:$0xff]  ;;  %s1063_s0 = smov 127   ;;  %s1066_s3 = smov 2   ;;  %vm64_vm12 = vcmask 523264  }
   0x7   :  { %v956_v1 = vld [vmem:[%s1452_s2] ss:$0 sm:$0xff]  ;;  %s1064_s2 = smov 126   ;;  %s1067_s6 = smov 125  }
   0x8   :  { %v957_v2 = vld [vmem:[%s1451_s1] ss:$0 sm:$0xff]  ;;  %v43_v3 = vmul.f32 %v956_v1, %v39_v0  ;;  %s1065_s1 = smov 1   ;;  %s1068_s7 = smov 122  }
   0x9   :  { %s1069_s8 = smov 123   ;;  %s1070_s9 = smov 3  }
   0xa   :  { %v1121_v4 = vadd.f32 %v957_v2, %v43_v3  ;;  %s1071_s10 = smov 124   ;;  %s1072_s11 = smov 64  }
   0xb   :  { %s912_s17 = sshll.u32 %s1455_s5, 4  ;;  %s913_s17 = int_to_ptr.hbm [resolvable:$true] %s912_s17 }
   0xc   :  { %v178_v5 = vmul.f32 %v956_v1, %v1121_v4  ;;  %v180_v6 = vmul.f32 %v1121_v4, %v1121_v4 }
   0xe   :  { %v1126_v7 = vadd.f32 %v957_v2, %v178_v5  ;;  %182 = vrot.lane.b32.xlu1 %v180_v6, %s1063_s0 }
  0x10   :  { %v520_v8 = vmul.f32 %v1126_v7, %v1126_v7 }
  0x12   :  { %522 = vrot.lane.b32.xlu0 %v520_v8, %s1063_s0 }
  0x16   :  { %186 = vrot.lane.b32.xlu1 %v180_v6, %s1064_s2 }
  0x1a   :  { %526 = vrot.lane.b32.xlu0 %v520_v8, %s1064_s2 }
  0x80   :  { %v183_v18 = vpop.permute.xlu1 %182 }
  0x81   :  { %v185_v23 = vadd.f32 %v183_v18, %v180_v6 }
  0x84   :  { %v523_v9 = vpop.permute.xlu0 %522 }
  0x85   :  { %v525_v10 = vadd.f32 %v523_v9, %v520_v8 }
  0x88   :  { %v187_v25 = vpop.permute.xlu1 %186 }
  0x89   :  { %v189_v26 = vadd.f32 %v187_v25, %v185_v23 }
  0x8b   :  { %vm197_vm6 = vcmp.eq.f32.partialorder %v189_v26, inf  ;;  %v200_v43 = vand.u32 2147483648, %v189_v26  ;;  %vm199_vm7 = vcmp.eq.f32.partialorder %v189_v26, 0.0 }
  0x8c   :  { %v527_v11 = vpop.permute.xlu0 %526 }
  0x8d   :  { %v529_v12 = vadd.f32 %v527_v11, %v525_v10 }
  0x8f   :  { %958 = vrsqrt.f32 %v529_v12  ;;  %vm537_vm0 = vcmp.eq.f32.partialorder %v529_v12, inf  ;;  %v540_v21 = vand.u32 2147483648, %v529_v12  ;;  %vm539_vm1 = vcmp.eq.f32.partialorder %v529_v12, 0.0 }
  0x95   :  { %v959_v13 = vpop.eup %958 }
  0x96   :  { %v531_v14 = vmul.f32 %v959_v13, %v529_v12 }
  0x98   :  { %v532_v15 = vmul.f32 %v959_v13, %v531_v14 }
  0x9a   :  { %v533_v16 = vmul.f32 0.5, %v532_v15 }
  0x9c   :  { %v534_v17 = vsub.f32 1.5, %v533_v16 }
  0x9e   :  { %v535_v19 = vmul.f32 %v959_v13, %v534_v17 }
  0xa0   :  { %v536_v20 = vmul.f32 %v535_v19, %v529_v12 }
  0xa2   :  { %v538_v22 = vsel %vm537_vm0, %v529_v12, %v536_v20 }
  0xa3   :  { %v1134_v24 = vsel %vm539_vm1, %v540_v21, %v538_v22 }
  0xa4   :  { %960 = vrcp.f32 %v1134_v24  ;;  %v559_v31 = vand.u32 2147483648, %v1134_v24  ;;  %v557_v33 = vand.u32 2147483647, %v1134_v24  ;;  %vm553_vm3 = vweird.f32 %v1134_v24 }
  0xa5   :  { %962 = vrsqrt.f32 %v189_v26 }
  0xa6   :  { %v560_v37 = vor.u32 1.1754944e-38, %v559_v31  ;;  %vm558_vm5 = vcmp.eq.f32.partialorder %v557_v33, 8.507059e+37 }
  0xaa   :  { %v961_v27 = vpop.eup %960 }
  0xab   :  { %v549_v28 = vmul.f32 %v961_v27, %v1134_v24  ;;  %v963_v30 = vpop.eup %962  ;;  %vm554_vm2 = vweird.f32 %v961_v27 }
  0xac   :  { %v191_v34 = vmul.f32 %v963_v30, %v189_v26  ;;  %vm555_vm4 = vmor %vm553_vm3, %vm554_vm2 }
  0xad   :  { %v550_v29 = vsub.f32 1.0, %v549_v28 }
  0xae   :  { %v192_v36 = vmul.f32 %v963_v30, %v191_v34 }
  0xaf   :  { %v551_v32 = vmul.f32 %v961_v27, %v550_v29 }
  0xb0   :  { %v193_v39 = vmul.f32 0.5, %v192_v36 }
  0xb1   :  { %v552_v35 = vadd.f32 %v961_v27, %v551_v32 }
  0xb2   :  { %v194_v41 = vsub.f32 1.5, %v193_v39  ;;  %v58_v39 = vld [vmem:[#allocation2 + $0x50] sm:$0xff] }
  0xb3   :  { %v556_v38 = vsel %vm555_vm4, %v961_v27, %v552_v35 }
  0xb4   :  { %v561_v40 = vsel %vm558_vm5, %v560_v37, %v556_v38  ;;  %v195_v42 = vmul.f32 %v963_v30, %v194_v41  ;;  %v62_v37 = vld [vmem:[#allocation2 + $0x70] sm:$0xff]  ;;  %v60_v38 = vld [vmem:[#allocation2 + $0x60] sm:$0xff] }
  0xb5   :  { %565 = vrot.lane.b32.xlu2 %v561_v40, %s1065_s1  ;;  %v1158_v61 = vmul.f32 %v561_v40, %v1126_v7  ;;  %76 = vmatpush.msra.mxu0 %v62_v37 }
  0xb6   :  { %v196_v44 = vmul.f32 %v195_v42, %v189_v26 }
  0xb7   :  { %77 = vmatpush.msra.mxu0 %v60_v38 }
  0xb8   :  { %v198_v45 = vsel %vm197_vm6, %v189_v26, %v196_v44  ;;  %v56_v44 = vld [vmem:[#allocation2 + $0x40] sm:$0xff] }
  0xb9   :  { %v1142_v46 = vsel %vm199_vm7, %v200_v43, %v198_v45  ;;  %78 = vmatpush.msra.mxu0 %v58_v39 }
  0xba   :  { %964 = vrcp.f32 %v1142_v46  ;;  %v219_v49 = vand.u32 2147483648, %v1142_v46  ;;  %vm213_vm8 = vweird.f32 %v1142_v46  ;;  %v217_v51 = vand.u32 2147483647, %v1142_v46 }
  0xbb   :  { %79 = vmatpush.msra.mxu0 %v56_v44 }
  0xbc   :  { %v220_v53 = vor.u32 1.1754944e-38, %v219_v49  ;;  %vm218_vm11 = vcmp.eq.f32.partialorder %v217_v51, 8.507059e+37 }
  0xbd   :  { %569 = vrot.lane.b32.xlu2 %v561_v40, %s1066_s3 }
  0xc0   :  { %v965_v47 = vpop.eup %964 }
  0xc1   :  { %v209_v48 = vmul.f32 %v965_v47, %v1142_v46  ;;  %vm214_vm9 = vweird.f32 %v965_v47 }
  0xc2   :  { %vm215_vm10 = vmor %vm213_vm8, %vm214_vm9 }
  0xc3   :  { %v210_v50 = vsub.f32 1.0, %v209_v48  ;;  %v54_v48 = vld [vmem:[#allocation2 + $0x30] sm:$0xff] }
  0xc4   :  { %80 = vmatpush.msra.mxu0 %v54_v48 }
  0xc5   :  { %v211_v52 = vmul.f32 %v965_v47, %v210_v50  ;;  %v52_v50 = vld [vmem:[#allocation2 + $0x20] sm:$0xff] }
  0xc6   :  { %81 = vmatpush.msra.mxu0 %v52_v50 }
  0xc7   :  { %v212_v54 = vadd.f32 %v965_v47, %v211_v52  ;;  %v50_v52 = vld [vmem:[#allocation2 + $0x10] sm:$0xff] }
  0xc8   :  { %82 = vmatpush.msra.mxu0 %v50_v52 }
  0xc9   :  { %v216_v55 = vsel %vm215_vm10, %v965_v47, %v212_v54  ;;  %v48_v54 = vld [vmem:[#allocation2] sm:$0xff] }
  0xca   :  { %v221_v56 = vsel %vm218_vm11, %v220_v53, %v216_v55  ;;  %83 = vmatpush.msra.mxu0 %v48_v54 }
  0xcb   :  { %225 = vrot.lane.b32.xlu1 %v221_v56, %s1065_s1  ;;  %v1194_v25 = vmul.f32 %v221_v56, %v1121_v4  ;;  %922 = vmatmul.msk.f32.vlgmr.msra.gmra.mxu0 %vm64_vm12, %v1121_v4 }
 0x10f   :  { %v566_v57 = vpop.permute.xlu2 %565 }
 0x110   :  { %v568_v58 = vmul.f32 %v566_v57, %v1126_v7 }
 0x112   :  { %579 = vrot.lane.b32.xlu0 %v568_v58, %s1067_s6 }
 0x117   :  { %v570_v59 = vpop.permute.xlu2 %569 }
 0x118   :  { %v572_v60 = vmul.f32 %v570_v59, %v1126_v7 }
 0x11a   :  { %593 = vrot.lane.b32.xlu0 %v572_v60, %s1068_s7  ;;  %574 = vrot.lane.b32.xlu2 %v572_v60, %s1069_s8 }
 0x122   :  { %229 = vrot.lane.b32.xlu0 %v221_v56, %s1066_s3  ;;  %624 = vrot.lane.b32.xlu2 %v568_v58, %s1070_s9 }
 0x12a   :  { %589 = vrot.lane.b32.xlu2 %v1158_v61, %s1064_s2 }
 0x13d   :  { %v226_v1 = vpop.permute.xlu1 %225 }
 0x13e   :  { %v1164_v3 = vmul.f32 %v226_v1, %v1121_v4 }
 0x174   :  { %v575_v62 = vpop.permute.xlu2 %574 }
 0x175   :  { %v577_v12 = vmul.f32 %v575_v62, %v568_v58 }
 0x17c   :  { %v625_v6 = vpop.permute.xlu2 %624 }
 0x17d   :  { %v1171_v8 = vsub.f32 %v1158_v61, %v625_v6 }
 0x17f   :  { %v631_v9 = vmul.f32 %v1171_v8, %v1171_v8 }
 0x184   :  { %v580_v63 = vpop.permute.xlu0 %579  ;;  %v590_v18 = vpop.permute.xlu2 %589 }
 0x185   :  { %v582_v0 = vmul.f32 %v580_v63, %v572_v60  ;;  %v592_v19 = vmul.f32 %v590_v18, %v572_v60 }
 0x187   :  { %584 = vrot.lane.b32.xlu1 %v582_v0, %s1063_s0 }
 0x18c   :  { %v594_v2 = vpop.permute.xlu0 %593 }
 0x18d   :  { %v596_v5 = vmul.f32 %v594_v2, %v1158_v61 }
 0x18f   :  { %239 = vrot.lane.b32.xlu1 %v1164_v3, %s1067_s6  ;;  %598 = vrot.lane.b32.xlu0 %v596_v5, %s1066_s3 }
 0x194   :  { %v230_v10 = vpop.permute.xlu0 %229 }
 0x195   :  { %v1178_v11 = vmul.f32 %v230_v10, %v1121_v4 }
 0x197   :  { %615 = vrot.lane.b32.xlu1 %v572_v60, %s1071_s10  ;;  %633 = vrot.lane.b32.xlu0 %v631_v9, %s1064_s2 }
 0x19f   :  { %606 = vrot.lane.b32.xlu1 %v1158_v61, %s1067_s6  ;;  %253 = vrot.lane.b32.xlu0 %v1178_v11, %s1068_s7 }
 0x1a7   :  { %602 = vrot.lane.b32.xlu0 %v568_v58, %s1069_s8 }
 0x1f9   :  { %v585_v13 = vpop.permute.xlu1 %584 }
 0x1fa   :  { %v587_v14 = vsub.f32 %v577_v12, %v585_v13 }
 0x1fc   :  { %620 = vrot.lane.b32.xlu2 %v587_v14, %s1065_s1 }
 0x201   :  { %v240_v15 = vpop.permute.xlu1 %239  ;;  %v599_v16 = vpop.permute.xlu0 %598 }
 0x202   :  { %v242_v17 = vmul.f32 %v240_v15, %v1178_v11  ;;  %v601_v20 = vsub.f32 %v592_v19, %v599_v16 }
 0x204   :  { %244 = vrot.lane.b32.xlu1 %v242_v17, %s1063_s0  ;;  %234 = vrot.lane.b32.xlu2 %v1178_v11, %s1069_s8 }
 0x209   :  { %v616_v21 = vpop.permute.xlu1 %615  ;;  %v634_v22 = vpop.permute.xlu0 %633 }
 0x20a   :  { %v1189_v23 = vsub.f32 %v601_v20, %v616_v21 }
 0x20c   :  { %284 = vrot.lane.b32.xlu2 %v1164_v3, %s1070_s9  ;;  %v628_v32 = vmul.f32 %v1189_v23, %v1189_v23 }
 0x211   :  { %v607_v26 = vpop.permute.xlu1 %606  ;;  %v254_v27 = vpop.permute.xlu0 %253 }
 0x212   :  { %v609_v28 = vmul.f32 %v607_v26, %v568_v58  ;;  %v256_v29 = vmul.f32 %v254_v27, %v1194_v25 }
 0x214   :  { %611 = vrot.lane.b32.xlu1 %v609_v28, %s1063_s0  ;;  %249 = vrot.lane.b32.xlu2 %v1194_v25, %s1064_s2 }
 0x215   :  { %258 = vrot.lane.b32.xlu0 %v256_v29, %s1066_s3 }
 0x219   :  { %v603_v1 = vpop.permute.xlu0 %602 }
 0x21a   :  { %v605_v16 = vmul.f32 %v603_v1, %v1158_v61  ;;  %v649_v20 = vadd.f32 %v603_v1, %v1158_v61 }
 0x21c   :  { %275 = vrot.lane.b32.xlu1 %v1178_v11, %s1071_s10 }
 0x256   :  { %v621_v30 = vpop.permute.xlu2 %620 }
 0x257   :  { %v1203_v31 = vsub.f32 %v572_v60, %v621_v30 }
 0x259   :  { %v629_v33 = vmul.f32 %v1203_v31, %v1203_v31 }
 0x25b   :  { %v630_v34 = vadd.f32 %v629_v33, %v628_v32 }
 0x25d   :  { %v636_v35 = vadd.f32 %v634_v22, %v630_v34 }
 0x25e   :  { %v235_v36 = vpop.permute.xlu2 %234 }
 0x25f   :  { %966 = vrsqrt.f32 %v636_v35  ;;  %vm644_vm13 = vcmp.eq.f32.partialorder %v636_v35, inf  ;;  %v647_v56 = vand.u32 2147483648, %v636_v35  ;;  %vm646_vm14 = vcmp.eq.f32.partialorder %v636_v35, 0.0 }
 0x260   :  { %v237_v60 = vmul.f32 %v235_v36, %v1164_v3 }
 0x265   :  { %v967_v40 = vpop.eup %966 }
 0x266   :  { %v285_v41 = vpop.permute.xlu2 %284  ;;  %v638_v42 = vmul.f32 %v967_v40, %v636_v35 }
 0x267   :  { %v1210_v43 = vsub.f32 %v1194_v25, %v285_v41 }
 0x268   :  { %v639_v45 = vmul.f32 %v967_v40, %v638_v42 }
 0x269   :  { %v291_v47 = vmul.f32 %v1210_v43, %v1210_v43 }
 0x26a   :  { %v640_v49 = vmul.f32 0.5, %v639_v45 }
 0x26b   :  { %293 = vrot.lane.b32.xlu1 %v291_v47, %s1064_s2 }
 0x26c   :  { %v641_v51 = vsub.f32 1.5, %v640_v49 }
 0x26e   :  { %v642_v53 = vmul.f32 %v967_v40, %v641_v51  ;;  %v250_v5 = vpop.permute.xlu2 %249 }
 0x26f   :  { %v252_v9 = vmul.f32 %v250_v5, %v1178_v11 }
 0x270   :  { %v643_v55 = vmul.f32 %v642_v53, %v636_v35 }
 0x272   :  { %v645_v57 = vsel %vm644_vm13, %v636_v35, %v643_v55 }
 0x273   :  { %v648_v58 = vsel %vm646_vm14, %v647_v56, %v645_v57 }
 0x274   :  { %v1217_v59 = vmul.f32 0.5, %v648_v58  ;;  %v777_v54 = vadd.f32 1e-08, %v648_v58 }
 0x276   :  { %v245_v62 = vpop.permute.xlu1 %244  ;;  %v656_v63 = vmul.f32 %v1217_v59, %v1217_v59 }
 0x277   :  { %v247_v0 = vsub.f32 %v237_v60, %v245_v62 }
 0x278   :  { %658 = vrot.lane.b32.xlu0 %v656_v63, %s1064_s2 }
 0x279   :  { %280 = vrot.lane.b32.xlu2 %v247_v0, %s1065_s1  ;;  %v1259_v0 = vpop.f32.mrf.mxu0 }
 0x280   :  { %262 = vrot.lane.b32.xlu0 %v1164_v3, %s1069_s8 }
 0x281   :  { %266 = vrot.lane.b32.xlu2 %v1194_v25, %s1067_s6 }
 0x286   :  { %v612_v2 = vpop.permute.xlu1 %611 }
 0x287   :  { %v259_v6 = vpop.permute.xlu0 %258  ;;  %v614_v18 = vsub.f32 %v605_v16, %v612_v2 }
 0x288   :  { %v261_v13 = vsub.f32 %v252_v9, %v259_v6 }
 0x289   :  { %v650_v27 = vadd.f32 %v649_v20, %v614_v18  ;;  %v55_v18 = vld [vmem:[#allocation2 + $0x38] sm:$0xff]  ;;  %v53_v20 = vld [vmem:[#allocation2 + $0x28] sm:$0xff] }
 0x28b   :  { %v925_v29 = vadd.f32 -1.0, %v650_v27  ;;  %v49_v27 = vld [vmem:[#allocation2 + $0x8] sm:$0xff] }
 0x28d   :  { %v1242_v30 = vmul.f32 0.5, %v925_v29 }
 0x28e   :  { %v276_v10 = vpop.permute.xlu1 %275 }
 0x28f   :  { %v1232_v15 = vsub.f32 %v261_v13, %v276_v10  ;;  %v655_v34 = vmul.f32 %v1242_v30, %v1242_v30  ;;  %v654_v56 = vand.u32 2147483647, %v1242_v30  ;;  %v63_v10 = vld [vmem:[#allocation2 + $0x78] sm:$0xff] }
 0x290   :  { %96 = vmatpush.msra.mxu1 %v63_v10  ;;  %v59_v13 = vld [vmem:[#allocation2 + $0x58] sm:$0xff] }
 0x291   :  { %v288_v19 = vmul.f32 %v1232_v15, %v1232_v15 }
 0x2d3   :  { %v281_v12 = vpop.permute.xlu2 %280 }
 0x2d4   :  { %v1230_v14 = vsub.f32 %v1178_v11, %v281_v12  ;;  %v61_v12 = vld [vmem:[#allocation2 + $0x68] sm:$0xff] }
 0x2d5   :  { %97 = vmatpush.msra.mxu1 %v61_v12 }
 0x2d6   :  { %v289_v17 = vmul.f32 %v1230_v14, %v1230_v14 }
 0x2d7   :  { %98 = vmatpush.msra.mxu1 %v59_v13 }
 0x2d8   :  { %v290_v26 = vadd.f32 %v289_v17, %v288_v19  ;;  %v57_v17 = vld [vmem:[#allocation2 + $0x48] sm:$0xff] }
 0x2d9   :  { %99 = vmatpush.msra.mxu1 %v57_v17 }
 0x2db   :  { %v267_v21 = vpop.permute.xlu2 %266  ;;  %100 = vmatpush.msra.mxu1 %v55_v18 }
 0x2dc   :  { %v269_v22 = vmul.f32 %v267_v21, %v1164_v3 }
 0x2dd   :  { %v294_v11 = vpop.permute.xlu1 %293  ;;  %101 = vmatpush.msra.mxu1 %v53_v20 }
 0x2de   :  { %v296_v28 = vadd.f32 %v294_v11, %v290_v26  ;;  %271 = vrot.lane.b32.xlu1 %v269_v22, %s1063_s0 }
 0x2e0   :  { %968 = vrsqrt.f32 %v296_v28  ;;  %vm304_vm15 = vcmp.eq.f32.partialorder %v296_v28, inf  ;;  %v307_v40 = vand.u32 2147483648, %v296_v28  ;;  %vm306_vm0 = vcmp.eq.f32.partialorder %v296_v28, 0.0 }
 0x2e6   :  { %v969_v32 = vpop.eup %968 }
 0x2e7   :  { %v298_v33 = vmul.f32 %v969_v32, %v296_v28 }
 0x2e9   :  { %v299_v35 = vmul.f32 %v969_v32, %v298_v33 }
 0x2ea   :  { %v659_v61 = vpop.permute.xlu0 %658 }
 0x2eb   :  { %v661_v36 = vadd.f32 %v659_v61, %v655_v34  ;;  %v300_v37 = vmul.f32 0.5, %v299_v35 }
 0x2ed   :  { %970 = vrsqrt.f32 %v661_v36  ;;  %v301_v3 = vsub.f32 1.5, %v300_v37  ;;  %vm669_vm1 = vcmp.eq.f32.partialorder %v661_v36, inf  ;;  %v672_v55 = vand.u32 2147483648, %v661_v36 }
 0x2ee   :  { %vm671_vm2 = vcmp.eq.f32.partialorder %v661_v36, 0.0 }
 0x2ef   :  { %v302_v38 = vmul.f32 %v969_v32, %v301_v3 }
 0x2f1   :  { %v303_v39 = vmul.f32 %v302_v38, %v296_v28 }
 0x2f2   :  { %v263_v58 = vpop.permute.xlu0 %262 }
 0x2f3   :  { %v971_v41 = vpop.eup %970  ;;  %v305_v42 = vsel %vm304_vm15, %v296_v28, %v303_v39  ;;  %v265_v2 = vmul.f32 %v263_v58, %v1194_v25  ;;  %v309_v6 = vadd.f32 %v263_v58, %v1194_v25  ;;  %v51_v25 = vld [vmem:[#allocation2 + $0x18] sm:$0xff] }
 0x2f4   :  { %v1246_v44 = vsel %vm306_vm0, %v307_v40, %v305_v42  ;;  %v663_v45 = vmul.f32 %v971_v41, %v661_v36  ;;  %102 = vmatpush.msra.mxu1 %v51_v25 }
 0x2f5   :  { %v1249_v47 = vmul.f32 0.5, %v1246_v44 }
 0x2f6   :  { %v664_v48 = vmul.f32 %v971_v41, %v663_v45  ;;  %103 = vmatpush.msra.mxu1 %v49_v27 }
 0x2f7   :  { %v316_v49 = vmul.f32 %v1249_v47, %v1249_v47  ;;  %923 = vmatmul.msk.f32.vlgmr.msra.gmra.mxu1 %vm64_vm12, %v1121_v4 }
 0x2f8   :  { %v665_v50 = vmul.f32 0.5, %v664_v48 }
 0x2f9   :  { %318 = vrot.lane.b32.xlu0 %v316_v49, %s1064_s2 }
 0x2fa   :  { %v666_v51 = vsub.f32 1.5, %v665_v50 }
 0x2fc   :  { %v667_v52 = vmul.f32 %v971_v41, %v666_v51 }
 0x2fe   :  { %v668_v53 = vmul.f32 %v667_v52, %v661_v36 }
 0x300   :  { %v670_v57 = vsel %vm669_vm1, %v661_v36, %v668_v53 }
 0x301   :  { %779 = vrot.lane.b32.xlu0 %v777_v54, %s1064_s2  ;;  %v673_v60 = vsel %vm671_vm2, %v672_v55, %v670_v57 }
 0x302   :  { %v674_v62 = vadd.f32 %v673_v60, %v654_v56 }
 0x304   :  { %v675_v63 = vadd.f32 1e-30, %v674_v62 }
 0x306   :  { %677 = vrot.lane.b32.xlu2 %v675_v63, %s1066_s3 }
 0x309   :  { %808 = vrot.lane.b32.xlu0 %v1171_v8, %s1071_s10 }
 0x30e   :  { %113 = vrot.lane.b32.xlu2 %v1259_v0, %s1072_s11 }
 0x316   :  { %803 = vrot.lane.b32.xlu2 %v1203_v31, %s1064_s2 }
 0x350   :  { %v272_v1 = vpop.permute.xlu1 %271 }
 0x351   :  { %v274_v5 = vsub.f32 %v265_v2, %v272_v1 }
 0x353   :  { %v310_v9 = vadd.f32 %v309_v6, %v274_v5 }
 0x355   :  { %v924_v16 = vadd.f32 -1.0, %v310_v9 }
 0x357   :  { %v1266_v31 = vmul.f32 0.5, %v924_v16 }
 0x359   :  { %v315_v26 = vmul.f32 %v1266_v31, %v1266_v31  ;;  %v314_v53 = vand.u32 2147483647, %v1266_v31 }
 0x360   :  { %v678_v8 = vpop.permute.xlu2 %677 }
 0x361   :  { %972 = vrcp.f32 %v678_v8  ;;  %v691_v11 = vand.u32 2147483648, %v678_v8  ;;  %v689_v32 = vand.u32 2147483647, %v678_v8  ;;  %vm685_vm4 = vweird.f32 %v678_v8 }
 0x363   :  { %v692_v35 = vor.u32 1.1754944e-38, %v691_v11  ;;  %vm690_vm6 = vcmp.eq.f32.partialorder %v689_v32, 8.507059e+37 }
 0x367   :  { %v973_v19 = vpop.eup %972 }
 0x368   :  { %v681_v21 = vmul.f32 %v973_v19, %v678_v8  ;;  %vm686_vm3 = vweird.f32 %v973_v19 }
 0x369   :  { %vm687_vm5 = vmor %vm685_vm4, %vm686_vm3 }
 0x36a   :  { %v682_v22 = vsub.f32 1.0, %v681_v21 }
 0x36b   :  { %v319_v28 = vpop.permute.xlu0 %318 }
 0x36c   :  { %v683_v29 = vmul.f32 %v973_v19, %v682_v22  ;;  %v321_v33 = vadd.f32 %v319_v28, %v315_v26 }
 0x36e   :  { %v684_v34 = vadd.f32 %v973_v19, %v683_v29  ;;  %974 = vrsqrt.f32 %v321_v33  ;;  %vm329_vm7 = vcmp.eq.f32.partialorder %v321_v33, inf  ;;  %v332_v52 = vand.u32 2147483648, %v321_v33 }
 0x36f   :  { %vm331_vm8 = vcmp.eq.f32.partialorder %v321_v33, 0.0 }
 0x370   :  { %v688_v61 = vsel %vm687_vm5, %v973_v19, %v684_v34 }
 0x371   :  { %v693_v36 = vsel %vm690_vm6, %v692_v35, %v688_v61  ;;  %v108_v35 = vmul.f32 %v1259_v0, %v1121_v4 }
 0x372   :  { %v694_v37 = vmul.f32 %v693_v36, %v1217_v59 }
 0x374   :  { %v975_v3 = vpop.eup %974  ;;  %v695_v38 = vmul.f32 %v694_v37, %v694_v37 }
 0x375   :  { %v323_v39 = vmul.f32 %v975_v3, %v321_v33 }
 0x376   :  { %v696_v40 = vadd.f32 1.0, %v695_v38 }
 0x377   :  { %v324_v41 = vmul.f32 %v975_v3, %v323_v39 }
 0x378   :  { %976 = vrsqrt.f32 %v696_v40  ;;  %vm704_vm9 = vcmp.eq.f32.partialorder %v696_v40, inf  ;;  %v707_v1 = vand.u32 2147483648, %v696_v40  ;;  %vm706_vm10 = vcmp.eq.f32.partialorder %v696_v40, 0.0 }
 0x379   :  { %v325_v42 = vmul.f32 0.5, %v324_v41 }
 0x37b   :  { %v326_v45 = vsub.f32 1.5, %v325_v42 }
 0x37d   :  { %v327_v48 = vmul.f32 %v975_v3, %v326_v45 }
 0x37e   :  { %v977_v49 = vpop.eup %976 }
 0x37f   :  { %v328_v50 = vmul.f32 %v327_v48, %v321_v33  ;;  %v698_v51 = vmul.f32 %v977_v49, %v696_v40 }
 0x381   :  { %v330_v54 = vsel %vm329_vm7, %v321_v33, %v328_v50  ;;  %v699_v55 = vmul.f32 %v977_v49, %v698_v51 }
 0x382   :  { %v333_v59 = vsel %vm331_vm8, %v332_v52, %v330_v54 }
 0x383   :  { %v334_v56 = vadd.f32 %v333_v59, %v314_v53  ;;  %v700_v57 = vmul.f32 0.5, %v699_v55 }
 0x385   :  { %v335_v60 = vadd.f32 1e-30, %v334_v56  ;;  %v701_v62 = vsub.f32 1.5, %v700_v57 }
 0x387   :  { %337 = vrot.lane.b32.xlu1 %v335_v60, %s1066_s3  ;;  %v702_v63 = vmul.f32 %v977_v49, %v701_v62 }
 0x389   :  { %v703_v58 = vmul.f32 %v702_v63, %v696_v40 }
 0x38b   :  { %v705_v2 = vsel %vm704_vm9, %v696_v40, %v703_v58 }
 0x38c   :  { %v708_v5 = vsel %vm706_vm10, %v707_v1, %v705_v2  ;;  %v1073_v1 = vmov 0  }
 0x38d   :  { %v709_v6 = vadd.f32 1.0, %v708_v5  ;;  %945 = vset.pattern.permute.xlu2 %v1073_v1  ;;  %947 = vset.pattern.permute.xlu0 %v1073_v1 }
 0x38e   :  { %946 = vset.pattern.permute.xlu1 %v1073_v1 }
 0x38f   :  { %543 = vrot.lane.b32.xlu1 %v1134_v24, %s1071_s10  ;;  %978 = vrcp.f32 %v709_v6  ;;  %v721_v8 = vand.u32 2147483648, %v709_v6  ;;  %v719_v16 = vand.u32 2147483647, %v709_v6  ;;  %vm715_vm13 = vweird.f32 %v709_v6 }
 0x391   :  { %v722_v18 = vor.u32 1.1754944e-38, %v721_v8  ;;  %vm720_vm15 = vcmp.eq.f32.partialorder %v719_v16, 8.507059e+37  ;;  %v114_v16 = vpop.permute.xlu2 %113 }
 0x395   :  { %v979_v9 = vpop.eup %978 }
 0x396   :  { %v711_v10 = vmul.f32 %v979_v9, %v709_v6  ;;  %vm716_vm11 = vweird.f32 %v979_v9 }
 0x397   :  { %798 = vrot.lane.b32.xlu1 %v1189_v23, %s1064_s2  ;;  %vm717_vm14 = vmor %vm715_vm13, %vm716_vm11 }
 0x398   :  { %v712_v12 = vsub.f32 1.0, %v711_v10 }
 0x39a   :  { %v713_v13 = vmul.f32 %v979_v9, %v712_v12  ;;  %v105_v12 = vpop.f32.mrf.mxu1 }
 0x39c   :  { %v714_v17 = vadd.f32 %v979_v9, %v713_v13 }
 0x39e   :  { %v718_v19 = vsel %vm717_vm14, %v979_v9, %v714_v17 }
 0x39f   :  { %v723_v20 = vsel %vm720_vm15, %v722_v18, %v718_v19  ;;  %v120_v18 = vmul.f32 %v105_v12, %v1121_v4  ;;  %v116_v19 = vmul.f32 %v114_v16, %v1121_v4 }
 0x3a0   :  { %v724_v21 = vmul.f32 %v723_v20, %v694_v37  ;;  %v109_v37 = vsel %vm64_vm12, %v108_v35, 0.0 }
 0x3a2   :  { %v725_v25 = vmul.f32 %v724_v21, %v724_v21 }
 0x3a4   :  { %v726_v22 = vadd.f32 1.0, %v725_v25 }
 0x3a6   :  { %980 = vrsqrt.f32 %v726_v22  ;;  %vm734_vm0 = vcmp.eq.f32.partialorder %v726_v22, inf  ;;  %v737_v33 = vand.u32 2147483648, %v726_v22  ;;  %vm736_vm1 = vcmp.eq.f32.partialorder %v726_v22, 0.0 }
 0x3ac   :  { %v981_v26 = vpop.eup %980 }
 0x3ad   :  { %v728_v27 = vmul.f32 %v981_v26, %v726_v22 }
 0x3af   :  { %v729_v11 = vmul.f32 %v981_v26, %v728_v27  ;;  %v117_v27 = vsel %vm64_vm12, %v116_v19, 0.0 }
 0x3b1   :  { %v730_v23 = vmul.f32 0.5, %v729_v11 }
 0x3b3   :  { %v731_v28 = vsub.f32 1.5, %v730_v23 }
 0x3b5   :  { %v732_v29 = vmul.f32 %v981_v26, %v731_v28 }
 0x3b7   :  { %v733_v32 = vmul.f32 %v732_v29, %v726_v22 }
 0x3b9   :  { %v735_v34 = vsel %vm734_vm0, %v726_v22, %v733_v32  ;;  %v121_v22 = vsel %vm64_vm12, %v120_v18, 0.0 }
 0x3ba   :  { %v738_v61 = vsel %vm736_vm1, %v737_v33, %v735_v34 }
 0x3bb   :  { %v739_v36 = vadd.f32 1.0, %v738_v61 }
 0x3bd   :  { %982 = vrcp.f32 %v739_v36  ;;  %v751_v40 = vand.u32 2147483648, %v739_v36  ;;  %v749_v42 = vand.u32 2147483647, %v739_v36  ;;  %vm745_vm3 = vweird.f32 %v739_v36 }
 0x3bf   :  { %v752_v48 = vor.u32 1.1754944e-38, %v751_v40  ;;  %vm750_vm5 = vcmp.eq.f32.partialorder %v749_v42, 8.507059e+37  ;;  %v1074_v42 = vmov 7  }
 0x3c1   :  { %110 = vadd.xlane.f32.xlu1 %v109_v37 }
 0x3c3   :  { %v983_v3 = vpop.eup %982 }
 0x3c4   :  { %v741_v38 = vmul.f32 %v983_v3, %v739_v36  ;;  %vm746_vm2 = vweird.f32 %v983_v3 }
 0x3c5   :  { %vm747_vm4 = vmor %vm745_vm3, %vm746_vm2 }
 0x3c6   :  { %v742_v39 = vsub.f32 1.0, %v741_v38 }
 0x3c8   :  { %v743_v41 = vmul.f32 %v983_v3, %v742_v39 }
 0x3ca   :  { %v744_v45 = vadd.f32 %v983_v3, %v743_v41 }
 0x3cc   :  { %v748_v49 = vsel %vm747_vm4, %v983_v3, %v744_v45 }
 0x3cd   :  { %v753_v0 = vsel %vm750_vm5, %v752_v48, %v748_v49  ;;  %vm766_vm5 = vcmp.lt.f32.partialorder %v1242_v30, 0.0 }
 0x3ce   :  { %v754_v50 = vmul.f32 %v753_v0, %v724_v21 }
 0x3d0   :  { %v755_v51 = vmul.f32 %v754_v50, %v754_v50  ;;  %v756_v60 = vmul.f32 8.0, %v754_v50 }
 0x3d2   :  { %v757_v52 = vmul.f32 0.11111111, %v755_v51 }
 0x3d4   :  { %v758_v53 = vadd.f32 -0.14285715, %v757_v52 }
 0x3d6   :  { %v759_v54 = vmul.f32 %v758_v53, %v755_v51  ;;  %v780_v53 = vpop.permute.xlu0 %779 }
 0x3d7   :  { %v793_v16 = vand.u32 2147483648, %v780_v53  ;;  %vm787_vm2 = vweird.f32 %v780_v53  ;;  %v791_v18 = vand.u32 2147483647, %v780_v53 }
 0x3d8   :  { %v760_v55 = vadd.f32 0.2, %v759_v54 }
 0x3da   :  { %v761_v59 = vmul.f32 %v760_v55, %v755_v51 }
 0x3dc   :  { %v762_v56 = vadd.f32 -0.33333334, %v761_v59 }
 0x3de   :  { %v763_v57 = vmul.f32 %v762_v56, %v755_v51 }
 0x3e0   :  { %v764_v62 = vadd.f32 1.0, %v763_v57 }
 0x3e2   :  { %v765_v63 = vmul.f32 %v764_v62, %v756_v60 }
 0x3e4   :  { %773 = vrot.lane.b32.xlu0 %v765_v63, %s1064_s2  ;;  %v767_v58 = vsub.f32 3.1415927, %v765_v63 }
 0x3e6   :  { %769 = vrot.lane.b32.xlu2 %v767_v58, %s1064_s2 }
 0x3f9   :  { %v338_v2 = vpop.permute.xlu1 %337 }
 0x3fa   :  { %984 = vrcp.f32 %v338_v2  ;;  %v351_v10 = vand.u32 2147483648, %v338_v2  ;;  %v349_v13 = vand.u32 2147483647, %v338_v2  ;;  %vm345_vm7 = vweird.f32 %v338_v2 }
 0x3fc   :  { %v352_v20 = vor.u32 1.1754944e-38, %v351_v10  ;;  %vm350_vm9 = vcmp.eq.f32.partialorder %v349_v13, 8.507059e+37  ;;  %v804_v10 = vpop.permute.xlu2 %803 }
 0x400   :  { %v985_v5 = vpop.eup %984 }
 0x401   :  { %v341_v6 = vmul.f32 %v985_v5, %v338_v2  ;;  %vm346_vm6 = vweird.f32 %v985_v5  ;;  %v544_v34 = vpop.permute.xlu1 %543 }
 0x402   :  { %vm347_vm8 = vmor %vm345_vm7, %vm346_vm6  ;;  %v546_v36 = vadd.f32 %v544_v34, %v1134_v24  ;;  %vm792_vm6 = vcmp.eq.f32.partialorder %v791_v18, 8.507059e+37 }
 0x403   :  { %v342_v9 = vsub.f32 1.0, %v341_v6 }
 0x404   :  { %v547_v38 = vmul.f32 0.5, %v546_v36 }
 0x405   :  { %v343_v8 = vmul.f32 %v985_v5, %v342_v9 }
 0x407   :  { %v344_v17 = vadd.f32 %v985_v5, %v343_v8 }
 0x409   :  { %v348_v21 = vsel %vm347_vm8, %v985_v5, %v344_v17 }
 0x40a   :  { %v353_v25 = vsel %vm350_vm9, %v352_v20, %v348_v21 }
 0x40b   :  { %v354_v26 = vmul.f32 %v353_v25, %v1249_v47 }
 0x40d   :  { %v355_v11 = vmul.f32 %v354_v26, %v354_v26 }
 0x40e   :  { %122 = vadd.xlane.f32.xlu0 %v121_v22  ;;  %v794_v22 = vor.u32 1.1754944e-38, %v793_v16 }
 0x40f   :  { %118 = vadd.xlane.f32.xlu2 %v117_v27  ;;  %v356_v23 = vadd.f32 1.0, %v355_v11 }
 0x411   :  { %986 = vrsqrt.f32 %v356_v23  ;;  %vm364_vm10 = vcmp.eq.f32.partialorder %v356_v23, inf  ;;  %v367_v3 = vand.u32 2147483648, %v356_v23  ;;  %vm366_vm11 = vcmp.eq.f32.partialorder %v356_v23, 0.0 }
 0x417   :  { %v987_v28 = vpop.eup %986 }
 0x418   :  { %v358_v29 = vmul.f32 %v987_v28, %v356_v23 }
 0x41a   :  { %v359_v32 = vmul.f32 %v987_v28, %v358_v29  ;;  %v799_v29 = vpop.permute.xlu1 %798 }
 0x41c   :  { %v360_v33 = vmul.f32 0.5, %v359_v32 }
 0x41e   :  { %v361_v35 = vsub.f32 1.5, %v360_v33 }
 0x420   :  { %v362_v61 = vmul.f32 %v987_v28, %v361_v35 }
 0x422   :  { %v363_v37 = vmul.f32 %v362_v61, %v356_v23 }
 0x424   :  { %v365_v47 = vsel %vm364_vm10, %v356_v23, %v363_v37 }
 0x425   :  { %v368_v39 = vsel %vm366_vm11, %v367_v3, %v365_v47  ;;  %v437_v47 = vadd.f32 1e-08, %v1246_v44  ;;  %v1076_v44 = vmov 11  }
 0x426   :  { %v369_v40 = vadd.f32 1.0, %v368_v39 }
 0x427   :  { %814 = vperm.xlu2 %945, %v547_v38  }
 0x428   :  { %988 = vrcp.f32 %v369_v40  ;;  %v381_v49 = vand.u32 2147483648, %v369_v40  ;;  %v379_v0 = vand.u32 2147483647, %v369_v40  ;;  %vm375_vm13 = vweird.f32 %v369_v40 }
 0x429   :  { %990 = vrcp.f32 %v780_v53 }
 0x42a   :  { %v382_v51 = vor.u32 1.1754944e-38, %v381_v49  ;;  %vm380_vm15 = vcmp.eq.f32.partialorder %v379_v0, 8.507059e+37 }
 0x42e   :  { %v989_v41 = vpop.eup %988 }
 0x42f   :  { %949 = vset.pattern.permute.xlu2 %v1074_v42  ;;  %v371_v45 = vmul.f32 %v989_v41, %v369_v40  ;;  %vm376_vm12 = vweird.f32 %v989_v41  ;;  %v991_v57 = vpop.eup %990  ;;  %v1075_v40 = vmov 3  }
 0x430   :  { %843 = vperm.xlu2 %949, %v1126_v7   ;;  %vm377_vm14 = vmor %vm375_vm13, %vm376_vm12  ;;  %v783_v60 = vmul.f32 %v991_v57, %v780_v53  ;;  %vm788_vm0 = vweird.f32 %v991_v57 }
 0x431   :  { %v372_v48 = vsub.f32 1.0, %v371_v45  ;;  %vm789_vm4 = vmor %vm787_vm2, %vm788_vm0 }
 0x432   :  { %v784_v58 = vsub.f32 1.0, %v783_v60 }
 0x433   :  { %v373_v24 = vmul.f32 %v989_v41, %v372_v48 }
 0x434   :  { %v785_v6 = vmul.f32 %v991_v57, %v784_v58 }
 0x435   :  { %v374_v50 = vadd.f32 %v989_v41, %v373_v24 }
 0x436   :  { %v786_v8 = vadd.f32 %v991_v57, %v785_v6 }
 0x437   :  { %v378_v52 = vsel %vm377_vm14, %v989_v41, %v374_v50 }
 0x438   :  { %951 = vset.pattern.permute.xlu2 %v1073_v1  ;;  %v383_v54 = vsel %vm380_vm15, %v382_v51, %v378_v52  ;;  %v809_v1 = vpop.permute.xlu0 %808  ;;  %v790_v21 = vsel %vm789_vm4, %v991_v57, %v786_v8 }
 0x439   :  { %v1296_v55 = vmul.f32 %v383_v54, %v354_v26  ;;  %v795_v11 = vsel %vm792_vm6, %v794_v22, %v790_v21 }
 0x43b   :  { %v385_v59 = vmul.f32 %v1296_v55, %v1296_v55 }
 0x43d   :  { %v386_v56 = vadd.f32 1.0, %v385_v59 }
 0x43f   :  { %992 = vrsqrt.f32 %v386_v56  ;;  %vm394_vm1 = vcmp.eq.f32.partialorder %v386_v56, inf  ;;  %v397_v17 = vand.u32 2147483648, %v386_v56  ;;  %vm396_vm3 = vcmp.eq.f32.partialorder %v386_v56, 0.0 }
 0x440   :  { %v770_v26 = vpop.permute.xlu2 %769 }
 0x445   :  { %v993_v62 = vpop.eup %992 }
 0x446   :  { %v388_v63 = vmul.f32 %v993_v62, %v386_v56 }
 0x448   :  { %v389_v2 = vmul.f32 %v993_v62, %v388_v63 }
 0x44a   :  { %v390_v5 = vmul.f32 0.5, %v389_v2 }
 0x44c   :  { %v391_v9 = vsub.f32 1.5, %v390_v5 }
 0x44e   :  { %v392_v12 = vmul.f32 %v993_v62, %v391_v9  ;;  %v111_v62 = vpop.xlane.xlu1 %110 }
 0x450   :  { %v393_v13 = vmul.f32 %v392_v12, %v386_v56 }
 0x452   :  { %v395_v19 = vsel %vm394_vm1, %v386_v56, %v393_v13 }
 0x453   :  { %v398_v20 = vsel %vm396_vm3, %v397_v17, %v395_v19 }
 0x454   :  { %v399_v25 = vadd.f32 1.0, %v398_v20 }
 0x456   :  { %v774_v27 = vpop.permute.xlu0 %773  ;;  %994 = vrcp.f32 %v399_v25  ;;  %v411_v37 = vand.u32 2147483648, %v399_v25  ;;  %v409_v30 = vand.u32 2147483647, %v399_v25  ;;  %vm405_vm8 = vweird.f32 %v399_v25 }
 0x457   :  { %v776_v23 = vsel %vm766_vm5, %v770_v26, %v774_v27 }
 0x458   :  { %v796_v28 = vmul.f32 %v795_v11, %v776_v23  ;;  %v412_v39 = vor.u32 1.1754944e-38, %v411_v37  ;;  %vm410_vm10 = vcmp.eq.f32.partialorder %v409_v30, 8.507059e+37 }
 0x45a   :  { %v811_v32 = vmul.f32 %v809_v1, %v796_v28  ;;  %v806_v33 = vmul.f32 %v804_v10, %v796_v28  ;;  %v801_v34 = vmul.f32 %v799_v29, %v796_v28 }
 0x45c   :  { %v995_v35 = vpop.eup %994  ;;  %832 = vperm.xlu2 %951, %v811_v32   ;;  %826 = vperm.xlu0 %947, %v806_v33  }
 0x45d   :  { %820 = vperm.xlu1 %946, %v801_v34   ;;  %v401_v61 = vmul.f32 %v995_v35, %v399_v25  ;;  %vm406_vm7 = vweird.f32 %v995_v35  ;;  %v472_v25 = vlaneseq }
 0x45e   :  { %vm407_vm9 = vmor %vm405_vm8, %vm406_vm7 }
 0x45f   :  { %v402_v36 = vsub.f32 1.0, %v401_v61  ;;  %v1337_v23 = vand.u32 127, %v472_v25 }
 0x461   :  { %v403_v3 = vmul.f32 %v995_v35, %v402_v36  ;;  %vm474_vm11 = vcmp.eq.s32.totalorder %v1337_v23, 0  ;;  %vm502_vm12 = vcmp.eq.s32.totalorder %v1337_v23, 4  ;;  %vm508_vm13 = vcmp.eq.s32.totalorder %v1337_v23, 5 }
 0x462   :  { %vm481_vm14 = vcmp.eq.s32.totalorder %v1337_v23, 1  ;;  %vm857_vm0 = vmor %vm502_vm12, %vm508_vm13  ;;  %vm488_vm1 = vcmp.eq.s32.totalorder %v1337_v23, 2  ;;  %vm495_vm4 = vcmp.eq.s32.totalorder %v1337_v23, 3  ;;  %vm514_vm7 = vcmp.eq.s32.totalorder %v1337_v23, 6 }
 0x463   :  { %v404_v38 = vadd.f32 %v995_v35, %v403_v3 }
 0x464   :  { %439 = vrot.lane.b32.xlu2 %v437_v47, %s1064_s2 }
 0x465   :  { %948 = vset.pattern.permute.xlu1 %v1075_v40  ;;  %v408_v41 = vsel %vm407_vm9, %v995_v35, %v404_v38 }
 0x466   :  { %838 = vperm.xlu1 %948, %v1126_v7   ;;  %v413_v45 = vsel %vm410_vm10, %v412_v39, %v408_v41 }
 0x467   :  { %v414_v48 = vmul.f32 %v413_v45, %v1296_v55 }
 0x469   :  { %v415_v49 = vmul.f32 %v414_v48, %v414_v48  ;;  %v416_v59 = vmul.f32 8.0, %v414_v48 }
 0x46b   :  { %v417_v24 = vmul.f32 0.11111111, %v415_v49 }
 0x46d   :  { %v418_v0 = vadd.f32 -0.14285715, %v417_v24 }
 0x46e   :  { %950 = vset.pattern.permute.xlu1 %v1076_v44 }
 0x46f   :  { %848 = vperm.xlu1 %950, %v1126_v7   ;;  %v419_v50 = vmul.f32 %v418_v0, %v415_v49  ;;  %v852_v0 = vld [vmem:[%s1454_s4] sm:$0xff]  ;;  %s1078_s4 = smov [#allocation5]  }
 0x470   :  { %s910_s14 = sshll.u32 %s1078_s4, 4  ;;  %s911_s14 = int_to_ptr.vmem [resolvable:$true] %s910_s14 }
 0x471   :  { %v420_v51 = vadd.f32 0.2, %v419_v50 }
 0x473   :  { %v421_v52 = vmul.f32 %v420_v51, %v415_v49 }
 0x475   :  { %v422_v53 = vadd.f32 -0.33333334, %v421_v52  ;;  %v1077_v52 = vmov 0.0  }
 0x477   :  { %203 = vrot.lane.b32.xlu1 %v1142_v46, %s1071_s10  ;;  %v423_v54 = vmul.f32 %v422_v53, %v415_v49  ;;  %v858_v53 = vsel %vm857_vm0, 11.489125, %v1077_v52 }
 0x479   :  { %v424_v56 = vadd.f32 1.0, %v423_v54 }
 0x47b   :  { %v425_v57 = vmul.f32 %v424_v56, %v416_v59  ;;  %v855_v56 = vand.u32 2147483647, %v852_v0 }
 0x47d   :  { %433 = vrot.lane.b32.xlu0 %v425_v57, %s1064_s2  ;;  %v427_v55 = vsub.f32 3.1415927, %v425_v57 }
 0x47f   :  { %458 = vrot.lane.b32.xlu1 %v1232_v15, %s1064_s2  ;;  %429 = vrot.lane.b32.xlu2 %v427_v55, %s1064_s2  ;;  %v1323_v15 = vmax.f32 %v111_v62, 0.0 }
 0x481   :  { %v123_v60 = vpop.xlane.xlu0 %122  ;;  %vm132_vm6 = vcmp.eq.f32.partialorder %v1323_v15, inf  ;;  %vm134_vm9 = vcmp.eq.f32.partialorder %v1323_v15, 0.0 }
 0x482   :  { %v119_v7 = vpop.xlane.xlu2 %118  ;;  %v1318_v58 = vmax.f32 %v123_v60, 0.0 }
 0x483   :  { %v163_v63 = vadd.f32 %v119_v7, %v111_v62  ;;  %v1320_v5 = vmax.f32 %v119_v7, 0.0 }
 0x484   :  { %996 = vrsqrt.f32 %v1318_v58  ;;  %vm158_vm15 = vcmp.eq.f32.partialorder %v1318_v58, inf  ;;  %v161_v41 = vand.u32 2147483648, %v1318_v58  ;;  %vm160_vm2 = vcmp.eq.f32.partialorder %v1318_v58, 0.0 }
 0x485   :  { %468 = vrot.lane.b32.xlu0 %v1210_v43, %s1071_s10  ;;  %v164_v6 = vadd.f32 %v163_v63, %v123_v60  ;;  %998 = vrsqrt.f32 %v1320_v5  ;;  %vm145_vm3 = vcmp.eq.f32.partialorder %v1320_v5, inf  ;;  %vm147_vm5 = vcmp.eq.f32.partialorder %v1320_v5, 0.0 }
 0x486   :  { %1000 = vrsqrt.f32 %v1323_v15  ;;  %v148_v54 = vand.u32 2147483648, %v1320_v5 }
 0x487   :  { %463 = vrot.lane.b32.xlu2 %v1230_v14, %s1064_s2  ;;  %v1326_v43 = vmax.f32 %v164_v6, 0.0  ;;  %v135_v6 = vand.u32 2147483648, %v1323_v15 }
 0x489   :  { %1002 = vrsqrt.f32 %v1326_v43  ;;  %vm173_vm8 = vcmp.eq.f32.partialorder %v1326_v43, inf  ;;  %vm175_vm10 = vcmp.eq.f32.partialorder %v1326_v43, 0.0 }
 0x48a   :  { %v815_v2 = vpop.permute.xlu2 %814  ;;  %v997_v14 = vpop.eup %996 }
 0x48b   :  { %v999_v10 = vpop.eup %998  ;;  %v152_v1 = vmul.f32 %v997_v14, %v1318_v58  ;;  %v817_v30 = vsel %vm474_vm11, %v815_v2, 0.0 }
 0x48c   :  { %v1001_v12 = vpop.eup %1000  ;;  %v139_v8 = vmul.f32 %v999_v10, %v1320_v5 }
 0x48d   :  { %v153_v16 = vmul.f32 %v997_v14, %v152_v1  ;;  %v126_v18 = vmul.f32 %v1001_v12, %v1323_v15 }
 0x48e   :  { %v140_v19 = vmul.f32 %v999_v10, %v139_v8 }
 0x48f   :  { %v1003_v13 = vpop.eup %1002  ;;  %v154_v21 = vmul.f32 0.5, %v153_v16  ;;  %v127_v22 = vmul.f32 %v1001_v12, %v126_v18 }
 0x490   :  { %v167_v20 = vmul.f32 %v1003_v13, %v1326_v43  ;;  %v141_v26 = vmul.f32 0.5, %v140_v19 }
 0x491   :  { %v155_v11 = vsub.f32 1.5, %v154_v21  ;;  %v128_v29 = vmul.f32 0.5, %v127_v22 }
 0x492   :  { %v1328_v9 = vpop.permute.xlu2 %843  ;;  %v168_v27 = vmul.f32 %v1003_v13, %v167_v20  ;;  %v142_v32 = vsub.f32 1.5, %v141_v26 }
 0x493   :  { %v156_v35 = vmul.f32 %v997_v14, %v155_v11  ;;  %v129_v61 = vsub.f32 1.5, %v128_v29 }
 0x494   :  { %v169_v33 = vmul.f32 0.5, %v168_v27  ;;  %v143_v36 = vmul.f32 %v999_v10, %v142_v32 }
 0x495   :  { %v157_v3 = vmul.f32 %v156_v35, %v1318_v58  ;;  %v130_v39 = vmul.f32 %v1001_v12, %v129_v61 }
 0x496   :  { %v170_v37 = vsub.f32 1.5, %v169_v33  ;;  %v144_v48 = vmul.f32 %v143_v36, %v1320_v5 }
 0x497   :  { %v159_v24 = vsel %vm158_vm15, %v1318_v58, %v157_v3  ;;  %v131_v62 = vmul.f32 %v130_v39, %v1323_v15  ;;  %vm867_vm15 = vcmask 64512  }
 0x498   :  { %v171_v49 = vmul.f32 %v1003_v13, %v170_v37  ;;  %v162_v59 = vsel %vm160_vm2, %v161_v41, %v159_v24  ;;  %v146_v57 = vsel %vm145_vm3, %v1320_v5, %v144_v48  ;;  %v1388_v5 = vsel %vm474_vm11, %v855_v56, %v852_v0 }
 0x499   :  { %v859_v58 = vsel %vm495_vm4, %v162_v59, %v858_v53  ;;  %v149_v2 = vsel %vm147_vm5, %v148_v54, %v146_v57  ;;  %v133_v8 = vsel %vm132_vm6, %v1323_v15, %v131_v62  ;;  %v176_v13 = vand.u32 2147483648, %v1326_v43 }
 0x49a   :  { %v172_v55 = vmul.f32 %v171_v49, %v1326_v43  ;;  %v136_v20 = vsel %vm134_vm9, %v135_v6, %v133_v8  ;;  %vm426_vm5 = vcmp.lt.f32.partialorder %v1266_v31, 0.0 }
 0x49c   :  { %v174_v14 = vsel %vm173_vm8, %v1326_v43, %v172_v55 }
 0x49d   :  { %v177_v19 = vsel %vm175_vm10, %v176_v13, %v174_v14 }
 0x4b6   :  { %v833_v17 = vpop.permute.xlu2 %832 }
 0x4be   :  { %v1339_v34 = vpop.permute.xlu2 %439 }
 0x4bf   :  { %1004 = vrcp.f32 %v1339_v34  ;;  %v453_v29 = vand.u32 2147483648, %v1339_v34  ;;  %vm447_vm2 = vweird.f32 %v1339_v34  ;;  %v451_v35 = vand.u32 2147483647, %v1339_v34 }
 0x4c1   :  { %v454_v37 = vor.u32 1.1754944e-38, %v453_v29  ;;  %vm452_vm6 = vcmp.eq.f32.partialorder %v451_v35, 8.507059e+37 }
 0x4c5   :  { %v1365_v50 = vpop.eup %1004 }
 0x4c6   :  { %v443_v7 = vmul.f32 %v1365_v50, %v1339_v34  ;;  %vm448_vm0 = vweird.f32 %v1365_v50 }
 0x4c7   :  { %vm449_vm3 = vmor %vm447_vm2, %vm448_vm0 }
 0x4c8   :  { %v444_v10 = vsub.f32 1.0, %v443_v7 }
 0x4ca   :  { %v445_v21 = vmul.f32 %v1365_v50, %v444_v10 }
 0x4ce   :  { %v827_v47 = vpop.permute.xlu0 %826 }
 0x4cf   :  { %v821_v28 = vpop.permute.xlu1 %820 }
 0x4d0   :  { %v823_v38 = vsel %vm481_vm14, %v821_v28, %v817_v30  ;;  %v446_v28 = vadd.f32 %v1365_v50, %v445_v21 }
 0x4d1   :  { %v829_v51 = vsel %vm488_vm1, %v827_v47, %v823_v38 }
 0x4d2   :  { %v835_v60 = vsel %vm495_vm4, %v833_v17, %v829_v51  ;;  %v860_v17 = vsel %vm488_vm1, %v149_v2, %v859_v58  ;;  %v450_v36 = vsel %vm449_vm3, %v1365_v50, %v446_v28 }
 0x4d3   :  { %v861_v15 = vsel %vm481_vm14, %v136_v20, %v860_v17 }
 0x4d4   :  { %v862_v22 = vsel %vm474_vm11, %v177_v19, %v861_v15 }
 0x4d8   :  { %v839_v45 = vpop.permute.xlu1 %838 }
 0x4d9   :  { %v841_v63 = vsel %vm502_vm12, %v839_v45, %v835_v60  ;;  %v430_v27 = vpop.permute.xlu2 %429 }
 0x4da   :  { %v846_v1 = vsel %vm508_vm13, %v1328_v9, %v841_v63 }
 0x4e1   :  { %v849_v12 = vpop.permute.xlu1 %848  ;;  %v464_v38 = vpop.permute.xlu2 %463 }
 0x4e2   :  { %v851_v16 = vsel %vm514_vm7, %v849_v12, %v846_v1  ;;  %v854_v1 = vshrl.u32 %v472_v25, 7 }
 0x4e3   :  { %v863_v18 = vsub.f32 %v1388_v5, %v851_v16 }
 0x4e5   :  { %v864_v9 = vand.u32 2147483647, %v863_v18 }
 0x4e7   :  { %v865_v26 = vmul.f32 %v864_v9, %v862_v22 }
 0x4e9   :  { %v204_v43 = vpop.permute.xlu1 %203  ;;  %v1409_v11 = vadd.f32 1e-06, %v865_v26 }
 0x4ea   :  { %v206_v32 = vadd.f32 %v204_v43, %v1142_v46  ;;  %v455_v46 = vsel %vm452_vm6, %v454_v37, %v450_v36 }
 0x4eb   :  { %v868_v33 = vsel %vm867_vm15, %v1409_v11, -inf }
 0x4ec   :  { %v207_v61 = vmul.f32 0.5, %v206_v32  ;;  %869 = vmax.xlane.f32.xlu1 %v868_v33 }
 0x4ee   :  { %477 = vperm.xlu2 %951, %v207_v61  }
 0x4ef   :  { %v434_v3 = vpop.permute.xlu0 %433 }
 0x4f0   :  { %v436_v30 = vsel %vm426_vm5, %v430_v27, %v434_v3 }
 0x4f1   :  { %v456_v47 = vmul.f32 %v455_v46, %v436_v30  ;;  %v459_v39 = vpop.permute.xlu1 %458 }
 0x4f3   :  { %v461_v41 = vmul.f32 %v459_v39, %v456_v47  ;;  %v466_v45 = vmul.f32 %v464_v38, %v456_v47 }
 0x4f5   :  { %484 = vperm.xlu0 %947, %v461_v41  }
 0x4f6   :  { %491 = vperm.xlu2 %951, %v466_v45  }
 0x4f7   :  { %v469_v34 = vpop.permute.xlu0 %468 }
 0x4f8   :  { %v471_v48 = vmul.f32 %v469_v34, %v456_v47 }
 0x4fd   :  { %498 = vperm.xlu0 %947, %v471_v48  }
 0x4fe   :  { %952 = vset.pattern.permute.xlu2 %v1075_v40 }
 0x4ff   :  { %504 = vperm.xlu2 %952, %v1121_v4  }
 0x505   :  { %953 = vset.pattern.permute.xlu0 %v1074_v42 }
 0x506   :  { %510 = vperm.xlu0 %953, %v1121_v4  }
 0x507   :  { %954 = vset.pattern.permute.xlu2 %v1076_v44 }
 0x508   :  { %516 = vperm.xlu2 %954, %v1121_v4  }
 0x50e   :  { %955 = vset.pattern.permute.xlu0 %v1076_v44 }
 0x548   :  { %v478_v31 = vpop.permute.xlu2 %477 }
 0x549   :  { %v480_v56 = vsel %vm474_vm11, %v478_v31, 0.0  ;;  %vm871_vm11 = vcmp.ge.s32.totalorder %v1337_v23, 6 }
 0x550   :  { %v492_v24 = vpop.permute.xlu2 %491 }
 0x559   :  { %v505_v53 = vpop.permute.xlu2 %504 }
 0x55f   :  { %v870_v49 = vpop.xlane.xlu1 %869 }
 0x560   :  { %1006 = vrcp.f32 %v870_v49  ;;  %v883_v42 = vand.u32 2147483648, %v870_v49  ;;  %vm877_vm9 = vweird.f32 %v870_v49  ;;  %v881_v4 = vand.u32 2147483647, %v870_v49 }
 0x562   :  { %v884_v55 = vor.u32 1.1754944e-38, %v883_v42  ;;  %vm882_vm0 = vcmp.eq.f32.partialorder %v881_v4, 8.507059e+37  ;;  %v517_v63 = vpop.permute.xlu2 %516 }
 0x566   :  { %v1007_v0 = vpop.eup %1006 }
 0x567   :  { %v873_v50 = vmul.f32 %v1007_v0, %v870_v49  ;;  %v485_v51 = vpop.permute.xlu0 %484  ;;  %vm878_vm8 = vweird.f32 %v1007_v0 }
 0x568   :  { %vm879_vm10 = vmor %vm877_vm9, %vm878_vm8  ;;  %v487_v44 = vsel %vm481_vm14, %v485_v51, %v480_v56  ;;  %vm891_vm14 = vcmp.lt.s32.totalorder %v854_v1, 2 }
 0x569   :  { %v874_v40 = vsub.f32 1.0, %v873_v50  ;;  %v494_v7 = vsel %vm488_vm1, %v492_v24, %v487_v44 }
 0x56b   :  { %v875_v52 = vmul.f32 %v1007_v0, %v874_v40 }
 0x56d   :  { %v876_v54 = vadd.f32 %v1007_v0, %v875_v52 }
 0x56f   :  { %v499_v59 = vpop.permute.xlu0 %498  ;;  %v880_v57 = vsel %vm879_vm10, %v1007_v0, %v876_v54 }
 0x570   :  { %v885_v60 = vsel %vm882_vm0, %v884_v55, %v880_v57  ;;  %v501_v62 = vsel %vm495_vm4, %v499_v59, %v494_v7 }
 0x571   :  { %v507_v58 = vsel %vm502_vm12, %v505_v53, %v501_v62  ;;  %v886_v6 = vmul.f32 %v885_v60, %v1409_v11  ;;  %vm903_vm12 = vcmask 0  }
 0x573   :  { %v887_v8 = vsel %vm871_vm11, 0.0, %v886_v6 }
 0x578   :  { %v511_v2 = vpop.permute.xlu0 %510 }
 0x579   :  { %v513_v14 = vsel %vm508_vm13, %v511_v2, %v507_v58 }
 0x57a   :  { %v519_v10 = vsel %vm514_vm7, %v517_v63, %v513_v14 }
 0x57b   :  { %v888_v12 = vsub.f32 %v1388_v5, %v519_v10 }
 0x57d   :  { %v889_v13 = vmul.f32 %v888_v12, %v887_v8 }
 0x57f   :  { %v890_v16 = vmul.f32 %v889_v13, %v888_v12 }
 0x581   :  { %v892_v17 = vsel %vm891_vm14, %v890_v16, 0.0 }
 0x582   :  { %v893_v18 = vsel %vm867_vm15, %v892_v17, 0.0 }
 0x583   :  { %894 = vadd.xlane.f32.xlu2 %v893_v18 }
 0x5f6   :  { %v895_v19 = vpop.xlane.xlu2 %894 }
 0x5f7   :  { %v896_v20 = vrot.slane %v895_v19, 4 }
 0x5f9   :  { %v897_v21 = vadd.f32 %v896_v20, %v895_v19 }
 0x5fb   :  { %v898_v9 = vrot.slane %v897_v21, 2 }
 0x5fd   :  { %v899_v15 = vadd.f32 %v898_v9, %v897_v21 }
 0x5ff   :  { %v900_v22 = vrot.slane %v899_v15, 1 }
 0x601   :  { %v901_v25 = vadd.f32 %v900_v22, %v899_v15 }
 0x603   :  { %v902_v23 = vmul.f32 0.071428575, %v901_v25 }
 0x605   :  { %904 = vst.msk [vmem:[#allocation5] sm:$0x1] %vm903_vm12, %v902_v23 }
 0x606   :  { %915 = dma.vmem_to_hbm [thread:$0]  %s911_s14, 16, %s913_s17, [#allocation4]  }
 0x607   :  { %1058 = dma.done.wait [#allocation4], 16  }
 0x608   :  { %1059 = vsyncadd [#allocation4], 4294967280 }
 0x609   :  { %920 = vsyncpa [#allocation3], 1 }
 0x60a   :  { %921 = vsyncpa [#allocation4], 1 }

</bundles_post_ra>
